<compile_context>
chip_gen: v7x
topology: tpu7x:2x2x1
jax: 0.10.0
libtpu: 0.0.40
codegen_flags: <defaults>
</compile_context>

<pallas_src>
import functools

import jax
import jax.numpy as jnp
from jax.experimental import pallas as pl
from jax.experimental.pallas import tpu as pltpu


def _round_up(x, m):
    return (x + m - 1) // m * m


# ------------------------------ Pallas kernel -------------------------------

def _basic_block_kernel(xp_ref, w1_ref, b1_ref, w2_ref, ws_ref, bo_ref,
                        o_ref, y1p_ref, *, stride, ho, wo):
    """One batch element per grid step.

    xp_ref : (s*s, Ho+E, Wo+E, Cin_p) bf16 phase-split padded input
    w1_ref : (3, 3, Cin_p, Cout_p)    bf16 conv1 weight  (BN1*gate folded)
    b1_ref : (1, Cout_p)              f32  conv1 shift
    w2_ref : (3, 3, Cout_p, Cout_p)   bf16 conv2 weight  (BN2 folded)
    ws_ref : (Cin_p, Cout_p)          bf16 shortcut weight (BNs folded / eye)
    bo_ref : (1, Cout_p)              f32  combined BN2 (+ shortcut BN) shift
    o_ref  : (Ho*Wo, Cout_p)          f32  output block (lane dense)
    y1p_ref: (Ho+2, Wo+2, Cout_p)     bf16 VMEM zero-halo scratch for y1
    """
    k = 3
    s = stride
    cin_p = xp_ref.shape[-1]
    cout_p = w1_ref.shape[-1]
    mm = ho * wo

    # ---- conv1 (3x3, stride s) + BN1*gate + ReLU, f32 accumulation -------
    acc = jnp.zeros((mm, cout_p), jnp.float32)
    for ki in range(k):
        p, di = ki % s, ki // s
        for kj in range(k):
            q, dj = kj % s, kj // s
            patch = xp_ref[p * s + q, di:di + ho, dj:dj + wo, :]
            acc = acc + jnp.dot(patch.reshape(mm, cin_p), w1_ref[ki, kj],
                                preferred_element_type=jnp.float32)
    y1 = jnp.maximum(acc + b1_ref[...], 0.0).astype(jnp.bfloat16)

    # ---- stage y1 in a zero-halo VMEM buffer (no HBM round trip) ----------
    y1p_ref[...] = jnp.zeros_like(y1p_ref)
    y1p_ref[1:ho + 1, 1:wo + 1, :] = y1.reshape(ho, wo, cout_p)

    # ---- conv2 (3x3, stride 1) + BN2 --------------------------------------
    acc = jnp.zeros((mm, cout_p), jnp.float32)
    for di in range(k):
        for dj in range(k):
            patch = y1p_ref[di:di + ho, dj:dj + wo, :]
            acc = acc + jnp.dot(patch.reshape(mm, cout_p), w2_ref[di, dj],
                                preferred_element_type=jnp.float32)

    # ---- fused shortcut: 1x1 projection (+BN) or identity-as-matmul -------
    p_sc, d_sc = 1 % s, 1 // s
    xs = xp_ref[p_sc * s + p_sc, d_sc:d_sc + ho, d_sc:d_sc + wo, :]
    acc = acc + jnp.dot(xs.reshape(mm, cin_p), ws_ref[...],
                        preferred_element_type=jnp.float32)

    # ---- combined shift + final ReLU --------------------------------------
    o_ref[...] = jnp.maximum(acc + bo_ref[...], 0.0).astype(o_ref.dtype)


# ------------------------------- JAX glue -----------------------------------

def _bn_affine(gamma, beta, mean, var, eps=1e-5, gate=None):
    inv = gamma / jnp.sqrt(var + eps)
    scale, shift = inv, beta - mean * inv
    if gate is not None:
        scale, shift = scale * gate, shift * gate
    return scale.astype(jnp.float32), shift.astype(jnp.float32)


def _pack_conv_weight(w_oihw, scale, cin_pad, cout_pad):
    """(Cout,Cin,kh,kw) -> bf16 (kh,kw,Cin_pad,Cout_pad) with BN scale folded."""
    cout, cin, kh, kw = w_oihw.shape
    w = jnp.transpose(w_oihw, (2, 3, 1, 0)) * scale.reshape(1, 1, 1, -1)
    w = jnp.pad(w, ((0, 0), (0, 0), (0, cin_pad - cin), (0, cout_pad - cout)))
    return w.astype(jnp.bfloat16)


def _pad_row(v, n_pad):
    return jnp.pad(v.reshape(1, -1),
                   ((0, 0), (0, n_pad - v.shape[0]))).astype(jnp.float32)


def _phase_split(x_nhwc, stride, cin_pad, k=3, pad=1):
    """Zero-pad spatially and split into stride*stride phase planes so every
    conv tap (and the strided 1x1 shortcut read) is a contiguous slice inside
    the kernel.  Single XLA pass over the activation (≈1x input traffic)."""
    n, h, w, c = x_nhwc.shape
    xp = jnp.pad(x_nhwc, ((0, 0), (pad, pad), (pad, pad), (0, cin_pad - c)))
    ho = (h + 2 * pad - k) // stride + 1
    wo = (w + 2 * pad - k) // stride + 1
    ext = (k - 1) // stride
    planes = []
    for p in range(stride):
        for q in range(stride):
            plane = xp[:, p::stride, q::stride, :][:, :ho + ext, :wo + ext, :]
            ph, pw = plane.shape[1], plane.shape[2]
            plane = jnp.pad(plane, ((0, 0), (0, ho + ext - ph),
                                    (0, wo + ext - pw), (0, 0)))
            planes.append(plane)
    phased = jnp.stack(planes, axis=1)       # (N, s*s, Ho+E, Wo+E, Cin_pad)
    return (phased.reshape(n * stride * stride, ho + ext, wo + ext, cin_pad),
            ho, wo, ext)


def basic_block_forward(x_nchw, params, stride):
    n, cin, h, w = x_nchw.shape
    cout = params["w1"].shape[0]
    cout_pad = _round_up(cout, 128)          # lane-dense output stores
    cin_pad = _round_up(cin, 16)             # bf16 sublane packing for K

    # Single-pass NCHW -> NHWC + bf16 cast (no f32 intermediate pass).
    x = jnp.transpose(x_nchw, (0, 2, 3, 1)).astype(jnp.bfloat16)

    # ARM hard-concrete gate, deterministic test mode.
    zeta, gamma_hc = 1.1, -0.1
    z = jnp.clip(jax.nn.sigmoid(params["arm_phi"]) * (zeta - gamma_hc) + gamma_hc,
                 0.0, 1.0)

    s1, b1 = _bn_affine(params["bn1_g"], params["bn1_b"],
                        params["bn1_m"], params["bn1_v"], gate=z)
    s2, b2 = _bn_affine(params["bn2_g"], params["bn2_b"],
                        params["bn2_m"], params["bn2_v"])
    w1p = _pack_conv_weight(params["w1"], s1, cin_pad, cout_pad)
    w2p = _pack_conv_weight(params["w2"], s2, cout_pad, cout_pad)

    if stride != 1 or cin != cout:
        ss, bs = _bn_affine(params["bns_g"], params["bns_b"],
                            params["bns_m"], params["bns_v"])
        wsp = _pack_conv_weight(params["ws"], ss, cin_pad, cout_pad)[0, 0]
        shift_out = b2 + bs
    else:
        # Identity shortcut expressed as an identity projection -> same fused
        # epilogue, no padded f32 HBM copy of x.
        eye = jnp.pad(jnp.eye(cin, dtype=jnp.float32),
                      ((0, cin_pad - cin), (0, cout_pad - cout)))
        wsp = eye.astype(jnp.bfloat16)
        shift_out = b2

    xp, ho, wo, ext = _phase_split(x, stride, cin_pad)
    # In-kernel (Ho,Wo,C)<->(Ho*Wo,C) reshapes are no-op relayouts when Wo%8==0
    # (always true for ResNet56 / CIFAR spatial sizes 32/16/8).
    assert wo % 8 == 0, "kernel assumes Wo to be a multiple of 8"

    b1v = _pad_row(b1, cout_pad)
    bov = _pad_row(shift_out, cout_pad)

    flops = 2 * n * ho * wo * cout_pad * (9 * cin_pad + 9 * cout_pad + cin_pad)
    bytes_accessed = (xp.size * 2 + w1p.size * 2 + w2p.size * 2 + wsp.size * 2
                      + (b1v.size + bov.size) * 4 + n * ho * wo * cout_pad * 4)

    kernel = functools.partial(_basic_block_kernel, stride=stride, ho=ho, wo=wo)
    out_flat = pl.pallas_call(
        kernel,
        out_shape=jax.ShapeDtypeStruct((n * ho * wo, cout_pad), jnp.float32),
        grid=(n,),                                   # >= 2 steps -> both v7x TCs
        in_specs=[
            # streamed per-image phase planes
            pl.BlockSpec((stride * stride, ho + ext, wo + ext, cin_pad),
                         lambda b: (b, 0, 0, 0)),
            # VMEM-resident weights / shifts (constant index maps)
            pl.BlockSpec(w1p.shape, lambda b: (0, 0, 0, 0)),
            pl.BlockSpec((1, cout_pad), lambda b: (0, 0)),
            pl.BlockSpec(w2p.shape, lambda b: (0, 0, 0, 0)),
            pl.BlockSpec((cin_pad, cout_pad), lambda b: (0, 0)),
            pl.BlockSpec((1, cout_pad), lambda b: (0, 0)),
        ],
        out_specs=pl.BlockSpec((ho * wo, cout_pad), lambda b: (b, 0)),
        scratch_shapes=[pltpu.VMEM((ho + 2, wo + 2, cout_pad), jnp.bfloat16)],
        compiler_params=pltpu.CompilerParams(
            dimension_semantics=("parallel",),
            vmem_limit_bytes=32 * 1024 * 1024),
        cost_estimate=pl.CostEstimate(flops=int(flops), transcendentals=0,
                                      bytes_accessed=int(bytes_accessed)),
    )(xp, w1p, b1v, w2p, wsp, bov)

    out = out_flat[:, :cout].reshape(n, ho, wo, cout)
    return jnp.transpose(out, (0, 3, 1, 2))          # back to NCHW, f32


# --------------------------- pure-JAX reference -----------------------------

def _ref_conv_bn(x_nhwc, w_oihw, gamma, beta, mean, var, stride, pad,
                 eps=1e-5, gate=None):
    y = jax.lax.conv_general_dilated(
        x_nhwc, jnp.transpose(w_oihw, (2, 3, 1, 0)),
        window_strides=(stride, stride),
        padding=[(pad, pad), (pad, pad)],
        dimension_numbers=("NHWC", "HWIO", "NHWC"))
    y = (y - mean) * (gamma / jnp.sqrt(var + eps)) + beta
    if gate is not None:
        y = y * gate
    return y


def basic_block_reference(x_nchw, params, stride):
    x = jnp.transpose(x_nchw, (0, 2, 3, 1)).astype(jnp.float32)
    cin = x.shape[-1]
    cout = params["w1"].shape[0]
    zeta, gamma_hc = 1.1, -0.1
    z = jnp.clip(jax.nn.sigmoid(params["arm_phi"]) * (zeta - gamma_hc) + gamma_hc,
                 0.0, 1.0)
    y1 = jax.nn.relu(_ref_conv_bn(x, params["w1"], params["bn1_g"],
                                  params["bn1_b"], params["bn1_m"],
                                  params["bn1_v"], stride, 1, gate=z))
    y2 = _ref_conv_bn(y1, params["w2"], params["bn2_g"], params["bn2_b"],
                      params["bn2_m"], params["bn2_v"], 1, 1)
    if stride != 1 or cin != cout:
        sc = _ref_conv_bn(x, params["ws"], params["bns_g"], params["bns_b"],
                          params["bns_m"], params["bns_v"], stride, 0)
    else:
        sc = x
    return jnp.transpose(jax.nn.relu(y2 + sc), (0, 3, 1, 2))


# --------------------------------- main -------------------------------------

def _init_params(key, cin, cout):
    ks = jax.random.split(key, 16)
    return {
        "w1": 0.1 * jax.random.normal(ks[0], (cout, cin, 3, 3), jnp.float32),
        "arm_phi": jax.random.normal(ks[1], (cout,), jnp.float32),
        "bn1_g": 1.0 + 0.1 * jax.random.normal(ks[2], (cout,), jnp.float32),
        "bn1_b": 0.1 * jax.random.normal(ks[3], (cout,), jnp.float32),
        "bn1_m": 0.1 * jax.random.normal(ks[4], (cout,), jnp.float32),
        "bn1_v": 0.5 + jnp.abs(jax.random.normal(ks[5], (cout,), jnp.float32)),
        "w2": 0.1 * jax.random.normal(ks[6], (cout, cout, 3, 3), jnp.float32),
        "bn2_g": 1.0 + 0.1 * jax.random.normal(ks[7], (cout,), jnp.float32),
        "bn2_b": 0.1 * jax.random.normal(ks[8], (cout,), jnp.float32),
        "bn2_m": 0.1 * jax.random.normal(ks[9], (cout,), jnp.float32),
        "bn2_v": 0.5 + jnp.abs(jax.random.normal(ks[10], (cout,), jnp.float32)),
        "ws": 0.1 * jax.random.normal(ks[11], (cout, cin, 1, 1), jnp.float32),
        "bns_g": 1.0 + 0.1 * jax.random.normal(ks[12], (cout,), jnp.float32),
        "bns_b": 0.1 * jax.random.normal(ks[13], (cout,), jnp.float32),
        "bns_m": 0.1 * jax.random.normal(ks[14], (cout,), jnp.float32),
        "bns_v": 0.5 + jnp.abs(jax.random.normal(ks[15], (cout,), jnp.float32)),
    }


if __name__ == "__main__":
    key = jax.random.PRNGKey(0)
    k_x, k_p = jax.random.split(key)

    batch, cin, cout, hw, stride = 2, 4, 8, 16, 2
    x = jax.random.normal(k_x, (batch, cin, hw, hw), jnp.float32)   # NCHW
    params = _init_params(k_p, cin, cout)

    out = jax.jit(basic_block_forward, static_argnums=2)(x, params, stride)
    out = jax.block_until_ready(out)

    ref = basic_block_reference(x, params, stride)
    ref = jax.block_until_ready(ref)

    assert out.shape == (batch, cout, hw // stride, hw // stride), out.shape
    # bf16 MXU inputs (f32 accumulation) => looser tolerance than pure-f32.
    assert jnp.allclose(out, ref, atol=3e-2, rtol=3e-2), \
        float(jnp.max(jnp.abs(out - ref)))

    print("KERNEL_OK")
</pallas_src>

<mosaic_0001>
module attributes {stable_mosaic.version = 11 : i64} {
  func.func @_basic_block_kernel(%arg0: i32, %arg1: memref<4x9x9x16xbf16, #tpu.memory_space<vmem>>, %arg2: memref<3x3x16x128xbf16, #tpu.memory_space<vmem>>, %arg3: memref<1x128xf32, #tpu.memory_space<vmem>>, %arg4: memref<3x3x128x128xbf16, #tpu.memory_space<vmem>>, %arg5: memref<16x128xbf16, #tpu.memory_space<vmem>>, %arg6: memref<1x128xf32, #tpu.memory_space<vmem>>, %arg7: memref<64x128xf32, #tpu.memory_space<vmem>>, %arg8: memref<10x10x128xbf16, #tpu.memory_space<vmem>>) attributes {dimension_semantics = [#tpu.dimension_semantics<parallel>], iteration_bounds = array<i64: 2>, scalar_prefetch = 0 : i64, scratch_operands = 1 : i64, tpu.core_type = #tpu.core_type<tc>, window_params = [{transform_indices = @transform_0, window_bounds = array<i64: 4, 9, 9, 16>}, {pipeline_mode = #tpu.pipeline_mode<synchronous>, transform_indices = @transform_1, window_bounds = array<i64: 3, 3, 16, 128>}, {pipeline_mode = #tpu.pipeline_mode<synchronous>, transform_indices = @transform_2, window_bounds = array<i64: 1, 128>}, {pipeline_mode = #tpu.pipeline_mode<synchronous>, transform_indices = @transform_3, window_bounds = array<i64: 3, 3, 128, 128>}, {pipeline_mode = #tpu.pipeline_mode<synchronous>, transform_indices = @transform_4, window_bounds = array<i64: 16, 128>}, {pipeline_mode = #tpu.pipeline_mode<synchronous>, transform_indices = @transform_5, window_bounds = array<i64: 1, 128>}, {transform_indices = @transform_6, window_bounds = array<i64: 64, 128>}]} {
    %cst = arith.constant 0.000000e+00 : f32
    %0 = vector.broadcast %cst : f32 to vector<64x128xf32>
    %c0 = arith.constant 0 : index
    %c0_0 = arith.constant 0 : index
    %c0_1 = arith.constant 0 : index
    %c0_2 = arith.constant 0 : index
    %1 = vector.load %arg1[%c0, %c0_0, %c0_1, %c0_2] : memref<4x9x9x16xbf16, #tpu.memory_space<vmem>>, vector<1x8x8x16xbf16>
    %2 = vector.shape_cast %1 : vector<1x8x8x16xbf16> to vector<8x8x16xbf16>
    %3 = vector.shape_cast %2 : vector<8x8x16xbf16> to vector<64x16xbf16>
    %c0_3 = arith.constant 0 : index
    %c0_4 = arith.constant 0 : index
    %c0_5 = arith.constant 0 : index
    %c0_6 = arith.constant 0 : index
    %4 = vector.load %arg2[%c0_3, %c0_4, %c0_5, %c0_6] : memref<3x3x16x128xbf16, #tpu.memory_space<vmem>>, vector<1x1x16x128xbf16>
    %5 = vector.shape_cast %4 : vector<1x1x16x128xbf16> to vector<16x128xbf16>
    %cst_7 = arith.constant dense<0.000000e+00> : vector<64x128xf32>
    %6 = tpu.matmul %3, %5, %cst_7 {dimension_numbers = #tpu.dot_dimension_numbers<[1], [0], [0], [1], [0, 0, 1, 1], [], []>} : vector<64x16xbf16>, vector<16x128xbf16>, vector<64x128xf32> -> vector<64x128xf32>
    %7 = arith.addf %0, %6 : vector<64x128xf32>
    %c1 = arith.constant 1 : index
    %c0_8 = arith.constant 0 : index
    %c0_9 = arith.constant 0 : index
    %c0_10 = arith.constant 0 : index
    %8 = vector.load %arg1[%c1, %c0_8, %c0_9, %c0_10] : memref<4x9x9x16xbf16, #tpu.memory_space<vmem>>, vector<1x8x8x16xbf16>
    %9 = vector.shape_cast %8 : vector<1x8x8x16xbf16> to vector<8x8x16xbf16>
    %10 = vector.shape_cast %9 : vector<8x8x16xbf16> to vector<64x16xbf16>
    %c0_11 = arith.constant 0 : index
    %c1_12 = arith.constant 1 : index
    %c0_13 = arith.constant 0 : index
    %c0_14 = arith.constant 0 : index
    %11 = vector.load %arg2[%c0_11, %c1_12, %c0_13, %c0_14] : memref<3x3x16x128xbf16, #tpu.memory_space<vmem>>, vector<1x1x16x128xbf16>
    %12 = vector.shape_cast %11 : vector<1x1x16x128xbf16> to vector<16x128xbf16>
    %cst_15 = arith.constant dense<0.000000e+00> : vector<64x128xf32>
    %13 = tpu.matmul %10, %12, %cst_15 {dimension_numbers = #tpu.dot_dimension_numbers<[1], [0], [0], [1], [0, 0, 1, 1], [], []>} : vector<64x16xbf16>, vector<16x128xbf16>, vector<64x128xf32> -> vector<64x128xf32>
    %14 = arith.addf %7, %13 : vector<64x128xf32>
    %c0_16 = arith.constant 0 : index
    %c0_17 = arith.constant 0 : index
    %c1_18 = arith.constant 1 : index
    %c0_19 = arith.constant 0 : index
    %15 = vector.load %arg1[%c0_16, %c0_17, %c1_18, %c0_19] : memref<4x9x9x16xbf16, #tpu.memory_space<vmem>>, vector<1x8x8x16xbf16>
    %16 = vector.shape_cast %15 : vector<1x8x8x16xbf16> to vector<8x8x16xbf16>
    %17 = vector.shape_cast %16 : vector<8x8x16xbf16> to vector<64x16xbf16>
    %c0_20 = arith.constant 0 : index
    %c2 = arith.constant 2 : index
    %c0_21 = arith.constant 0 : index
    %c0_22 = arith.constant 0 : index
    %18 = vector.load %arg2[%c0_20, %c2, %c0_21, %c0_22] : memref<3x3x16x128xbf16, #tpu.memory_space<vmem>>, vector<1x1x16x128xbf16>
    %19 = vector.shape_cast %18 : vector<1x1x16x128xbf16> to vector<16x128xbf16>
    %cst_23 = arith.constant dense<0.000000e+00> : vector<64x128xf32>
    %20 = tpu.matmul %17, %19, %cst_23 {dimension_numbers = #tpu.dot_dimension_numbers<[1], [0], [0], [1], [0, 0, 1, 1], [], []>} : vector<64x16xbf16>, vector<16x128xbf16>, vector<64x128xf32> -> vector<64x128xf32>
    %21 = arith.addf %14, %20 : vector<64x128xf32>
    %c2_24 = arith.constant 2 : index
    %c0_25 = arith.constant 0 : index
    %c0_26 = arith.constant 0 : index
    %c0_27 = arith.constant 0 : index
    %22 = vector.load %arg1[%c2_24, %c0_25, %c0_26, %c0_27] : memref<4x9x9x16xbf16, #tpu.memory_space<vmem>>, vector<1x8x8x16xbf16>
    %23 = vector.shape_cast %22 : vector<1x8x8x16xbf16> to vector<8x8x16xbf16>
    %24 = vector.shape_cast %23 : vector<8x8x16xbf16> to vector<64x16xbf16>
    %c1_28 = arith.constant 1 : index
    %c0_29 = arith.constant 0 : index
    %c0_30 = arith.constant 0 : index
    %c0_31 = arith.constant 0 : index
    %25 = vector.load %arg2[%c1_28, %c0_29, %c0_30, %c0_31] : memref<3x3x16x128xbf16, #tpu.memory_space<vmem>>, vector<1x1x16x128xbf16>
    %26 = vector.shape_cast %25 : vector<1x1x16x128xbf16> to vector<16x128xbf16>
    %cst_32 = arith.constant dense<0.000000e+00> : vector<64x128xf32>
    %27 = tpu.matmul %24, %26, %cst_32 {dimension_numbers = #tpu.dot_dimension_numbers<[1], [0], [0], [1], [0, 0, 1, 1], [], []>} : vector<64x16xbf16>, vector<16x128xbf16>, vector<64x128xf32> -> vector<64x128xf32>
    %28 = arith.addf %21, %27 : vector<64x128xf32>
    %c3 = arith.constant 3 : index
    %c0_33 = arith.constant 0 : index
    %c0_34 = arith.constant 0 : index
    %c0_35 = arith.constant 0 : index
    %29 = vector.load %arg1[%c3, %c0_33, %c0_34, %c0_35] : memref<4x9x9x16xbf16, #tpu.memory_space<vmem>>, vector<1x8x8x16xbf16>
    %30 = vector.shape_cast %29 : vector<1x8x8x16xbf16> to vector<8x8x16xbf16>
    %31 = vector.shape_cast %30 : vector<8x8x16xbf16> to vector<64x16xbf16>
    %c1_36 = arith.constant 1 : index
    %c1_37 = arith.constant 1 : index
    %c0_38 = arith.constant 0 : index
    %c0_39 = arith.constant 0 : index
    %32 = vector.load %arg2[%c1_36, %c1_37, %c0_38, %c0_39] : memref<3x3x16x128xbf16, #tpu.memory_space<vmem>>, vector<1x1x16x128xbf16>
    %33 = vector.shape_cast %32 : vector<1x1x16x128xbf16> to vector<16x128xbf16>
    %cst_40 = arith.constant dense<0.000000e+00> : vector<64x128xf32>
    %34 = tpu.matmul %31, %33, %cst_40 {dimension_numbers = #tpu.dot_dimension_numbers<[1], [0], [0], [1], [0, 0, 1, 1], [], []>} : vector<64x16xbf16>, vector<16x128xbf16>, vector<64x128xf32> -> vector<64x128xf32>
    %35 = arith.addf %28, %34 : vector<64x128xf32>
    %c2_41 = arith.constant 2 : index
    %c0_42 = arith.constant 0 : index
    %c1_43 = arith.constant 1 : index
    %c0_44 = arith.constant 0 : index
    %36 = vector.load %arg1[%c2_41, %c0_42, %c1_43, %c0_44] : memref<4x9x9x16xbf16, #tpu.memory_space<vmem>>, vector<1x8x8x16xbf16>
    %37 = vector.shape_cast %36 : vector<1x8x8x16xbf16> to vector<8x8x16xbf16>
    %38 = vector.shape_cast %37 : vector<8x8x16xbf16> to vector<64x16xbf16>
    %c1_45 = arith.constant 1 : index
    %c2_46 = arith.constant 2 : index
    %c0_47 = arith.constant 0 : index
    %c0_48 = arith.constant 0 : index
    %39 = vector.load %arg2[%c1_45, %c2_46, %c0_47, %c0_48] : memref<3x3x16x128xbf16, #tpu.memory_space<vmem>>, vector<1x1x16x128xbf16>
    %40 = vector.shape_cast %39 : vector<1x1x16x128xbf16> to vector<16x128xbf16>
    %cst_49 = arith.constant dense<0.000000e+00> : vector<64x128xf32>
    %41 = tpu.matmul %38, %40, %cst_49 {dimension_numbers = #tpu.dot_dimension_numbers<[1], [0], [0], [1], [0, 0, 1, 1], [], []>} : vector<64x16xbf16>, vector<16x128xbf16>, vector<64x128xf32> -> vector<64x128xf32>
    %42 = arith.addf %35, %41 : vector<64x128xf32>
    %c0_50 = arith.constant 0 : index
    %c1_51 = arith.constant 1 : index
    %c0_52 = arith.constant 0 : index
    %c0_53 = arith.constant 0 : index
    %43 = vector.load %arg1[%c0_50, %c1_51, %c0_52, %c0_53] : memref<4x9x9x16xbf16, #tpu.memory_space<vmem>>, vector<1x8x8x16xbf16>
    %44 = vector.shape_cast %43 : vector<1x8x8x16xbf16> to vector<8x8x16xbf16>
    %45 = vector.shape_cast %44 : vector<8x8x16xbf16> to vector<64x16xbf16>
    %c2_54 = arith.constant 2 : index
    %c0_55 = arith.constant 0 : index
    %c0_56 = arith.constant 0 : index
    %c0_57 = arith.constant 0 : index
    %46 = vector.load %arg2[%c2_54, %c0_55, %c0_56, %c0_57] : memref<3x3x16x128xbf16, #tpu.memory_space<vmem>>, vector<1x1x16x128xbf16>
    %47 = vector.shape_cast %46 : vector<1x1x16x128xbf16> to vector<16x128xbf16>
    %cst_58 = arith.constant dense<0.000000e+00> : vector<64x128xf32>
    %48 = tpu.matmul %45, %47, %cst_58 {dimension_numbers = #tpu.dot_dimension_numbers<[1], [0], [0], [1], [0, 0, 1, 1], [], []>} : vector<64x16xbf16>, vector<16x128xbf16>, vector<64x128xf32> -> vector<64x128xf32>
    %49 = arith.addf %42, %48 : vector<64x128xf32>
    %c1_59 = arith.constant 1 : index
    %c1_60 = arith.constant 1 : index
    %c0_61 = arith.constant 0 : index
    %c0_62 = arith.constant 0 : index
    %50 = vector.load %arg1[%c1_59, %c1_60, %c0_61, %c0_62] : memref<4x9x9x16xbf16, #tpu.memory_space<vmem>>, vector<1x8x8x16xbf16>
    %51 = vector.shape_cast %50 : vector<1x8x8x16xbf16> to vector<8x8x16xbf16>
    %52 = vector.shape_cast %51 : vector<8x8x16xbf16> to vector<64x16xbf16>
    %c2_63 = arith.constant 2 : index
    %c1_64 = arith.constant 1 : index
    %c0_65 = arith.constant 0 : index
    %c0_66 = arith.constant 0 : index
    %53 = vector.load %arg2[%c2_63, %c1_64, %c0_65, %c0_66] : memref<3x3x16x128xbf16, #tpu.memory_space<vmem>>, vector<1x1x16x128xbf16>
    %54 = vector.shape_cast %53 : vector<1x1x16x128xbf16> to vector<16x128xbf16>
    %cst_67 = arith.constant dense<0.000000e+00> : vector<64x128xf32>
    %55 = tpu.matmul %52, %54, %cst_67 {dimension_numbers = #tpu.dot_dimension_numbers<[1], [0], [0], [1], [0, 0, 1, 1], [], []>} : vector<64x16xbf16>, vector<16x128xbf16>, vector<64x128xf32> -> vector<64x128xf32>
    %56 = arith.addf %49, %55 : vector<64x128xf32>
    %c0_68 = arith.constant 0 : index
    %c1_69 = arith.constant 1 : index
    %c1_70 = arith.constant 1 : index
    %c0_71 = arith.constant 0 : index
    %57 = vector.load %arg1[%c0_68, %c1_69, %c1_70, %c0_71] : memref<4x9x9x16xbf16, #tpu.memory_space<vmem>>, vector<1x8x8x16xbf16>
    %58 = vector.shape_cast %57 : vector<1x8x8x16xbf16> to vector<8x8x16xbf16>
    %59 = vector.shape_cast %58 : vector<8x8x16xbf16> to vector<64x16xbf16>
    %c2_72 = arith.constant 2 : index
    %c2_73 = arith.constant 2 : index
    %c0_74 = arith.constant 0 : index
    %c0_75 = arith.constant 0 : index
    %60 = vector.load %arg2[%c2_72, %c2_73, %c0_74, %c0_75] : memref<3x3x16x128xbf16, #tpu.memory_space<vmem>>, vector<1x1x16x128xbf16>
    %61 = vector.shape_cast %60 : vector<1x1x16x128xbf16> to vector<16x128xbf16>
    %cst_76 = arith.constant dense<0.000000e+00> : vector<64x128xf32>
    %62 = tpu.matmul %59, %61, %cst_76 {dimension_numbers = #tpu.dot_dimension_numbers<[1], [0], [0], [1], [0, 0, 1, 1], [], []>} : vector<64x16xbf16>, vector<16x128xbf16>, vector<64x128xf32> -> vector<64x128xf32>
    %63 = arith.addf %56, %62 : vector<64x128xf32>
    %c0_77 = arith.constant 0 : index
    %c0_78 = arith.constant 0 : index
    %64 = vector.load %arg3[%c0_77, %c0_78] : memref<1x128xf32, #tpu.memory_space<vmem>>, vector<1x128xf32>
    %65 = vector.broadcast %64 : vector<1x128xf32> to vector<64x128xf32>
    %66 = arith.addf %63, %65 : vector<64x128xf32>
    %cst_79 = arith.constant 0.000000e+00 : f32
    %67 = vector.broadcast %cst_79 : f32 to vector<64x128xf32>
    %68 = arith.maximumf %66, %67 : vector<64x128xf32>
    %69 = arith.truncf %68 : vector<64x128xf32> to vector<64x128xbf16>
    %cst_80 = arith.constant 0.000000e+00 : bf16
    %70 = vector.broadcast %cst_80 : bf16 to vector<10x10x128xbf16>
    %c0_81 = arith.constant 0 : index
    %c0_82 = arith.constant 0 : index
    %c0_83 = arith.constant 0 : index
    %71 = vector.load %arg8[%c0_81, %c0_82, %c0_83] : memref<10x10x128xbf16, #tpu.memory_space<vmem>>, vector<10x10x128xbf16>
    tpu.vector_store %arg8[%c0_81, %c0_82, %c0_83], %70 {strides = array<i32>} : memref<10x10x128xbf16, #tpu.memory_space<vmem>>, vector<10x10x128xbf16>,
    %72 = vector.shape_cast %69 : vector<64x128xbf16> to vector<8x8x128xbf16>
    %c1_84 = arith.constant 1 : index
    %c1_85 = arith.constant 1 : index
    %c0_86 = arith.constant 0 : index
    %73 = vector.load %arg8[%c1_84, %c1_85, %c0_86] : memref<10x10x128xbf16, #tpu.memory_space<vmem>>, vector<8x8x128xbf16>
    tpu.vector_store %arg8[%c1_84, %c1_85, %c0_86], %72 {strides = array<i32>} : memref<10x10x128xbf16, #tpu.memory_space<vmem>>, vector<8x8x128xbf16>,
    %cst_87 = arith.constant 0.000000e+00 : f32
    %74 = vector.broadcast %cst_87 : f32 to vector<64x128xf32>
    %c0_88 = arith.constant 0 : index
    %c0_89 = arith.constant 0 : index
    %c0_90 = arith.constant 0 : index
    %75 = vector.load %arg8[%c0_88, %c0_89, %c0_90] : memref<10x10x128xbf16, #tpu.memory_space<vmem>>, vector<8x8x128xbf16>
    %76 = vector.shape_cast %75 : vector<8x8x128xbf16> to vector<64x128xbf16>
    %c0_91 = arith.constant 0 : index
    %c0_92 = arith.constant 0 : index
    %c0_93 = arith.constant 0 : index
    %c0_94 = arith.constant 0 : index
    %77 = vector.load %arg4[%c0_91, %c0_92, %c0_93, %c0_94] : memref<3x3x128x128xbf16, #tpu.memory_space<vmem>>, vector<1x1x128x128xbf16>
    %78 = vector.shape_cast %77 : vector<1x1x128x128xbf16> to vector<128x128xbf16>
    %cst_95 = arith.constant dense<0.000000e+00> : vector<64x128xf32>
    %79 = tpu.matmul %76, %78, %cst_95 {dimension_numbers = #tpu.dot_dimension_numbers<[1], [0], [0], [1], [0, 0, 1, 1], [], []>} : vector<64x128xbf16>, vector<128x128xbf16>, vector<64x128xf32> -> vector<64x128xf32>
    %80 = arith.addf %74, %79 : vector<64x128xf32>
    %c0_96 = arith.constant 0 : index
    %c1_97 = arith.constant 1 : index
    %c0_98 = arith.constant 0 : index
    %81 = vector.load %arg8[%c0_96, %c1_97, %c0_98] : memref<10x10x128xbf16, #tpu.memory_space<vmem>>, vector<8x8x128xbf16>
    %82 = vector.shape_cast %81 : vector<8x8x128xbf16> to vector<64x128xbf16>
    %c0_99 = arith.constant 0 : index
    %c1_100 = arith.constant 1 : index
    %c0_101 = arith.constant 0 : index
    %c0_102 = arith.constant 0 : index
    %83 = vector.load %arg4[%c0_99, %c1_100, %c0_101, %c0_102] : memref<3x3x128x128xbf16, #tpu.memory_space<vmem>>, vector<1x1x128x128xbf16>
    %84 = vector.shape_cast %83 : vector<1x1x128x128xbf16> to vector<128x128xbf16>
    %cst_103 = arith.constant dense<0.000000e+00> : vector<64x128xf32>
    %85 = tpu.matmul %82, %84, %cst_103 {dimension_numbers = #tpu.dot_dimension_numbers<[1], [0], [0], [1], [0, 0, 1, 1], [], []>} : vector<64x128xbf16>, vector<128x128xbf16>, vector<64x128xf32> -> vector<64x128xf32>
    %86 = arith.addf %80, %85 : vector<64x128xf32>
    %c0_104 = arith.constant 0 : index
    %c2_105 = arith.constant 2 : index
    %c0_106 = arith.constant 0 : index
    %87 = vector.load %arg8[%c0_104, %c2_105, %c0_106] : memref<10x10x128xbf16, #tpu.memory_space<vmem>>, vector<8x8x128xbf16>
    %88 = vector.shape_cast %87 : vector<8x8x128xbf16> to vector<64x128xbf16>
    %c0_107 = arith.constant 0 : index
    %c2_108 = arith.constant 2 : index
    %c0_109 = arith.constant 0 : index
    %c0_110 = arith.constant 0 : index
    %89 = vector.load %arg4[%c0_107, %c2_108, %c0_109, %c0_110] : memref<3x3x128x128xbf16, #tpu.memory_space<vmem>>, vector<1x1x128x128xbf16>
    %90 = vector.shape_cast %89 : vector<1x1x128x128xbf16> to vector<128x128xbf16>
    %cst_111 = arith.constant dense<0.000000e+00> : vector<64x128xf32>
    %91 = tpu.matmul %88, %90, %cst_111 {dimension_numbers = #tpu.dot_dimension_numbers<[1], [0], [0], [1], [0, 0, 1, 1], [], []>} : vector<64x128xbf16>, vector<128x128xbf16>, vector<64x128xf32> -> vector<64x128xf32>
    %92 = arith.addf %86, %91 : vector<64x128xf32>
    %c1_112 = arith.constant 1 : index
    %c0_113 = arith.constant 0 : index
    %c0_114 = arith.constant 0 : index
    %93 = vector.load %arg8[%c1_112, %c0_113, %c0_114] : memref<10x10x128xbf16, #tpu.memory_space<vmem>>, vector<8x8x128xbf16>
    %94 = vector.shape_cast %93 : vector<8x8x128xbf16> to vector<64x128xbf16>
    %c1_115 = arith.constant 1 : index
    %c0_116 = arith.constant 0 : index
    %c0_117 = arith.constant 0 : index
    %c0_118 = arith.constant 0 : index
    %95 = vector.load %arg4[%c1_115, %c0_116, %c0_117, %c0_118] : memref<3x3x128x128xbf16, #tpu.memory_space<vmem>>, vector<1x1x128x128xbf16>
    %96 = vector.shape_cast %95 : vector<1x1x128x128xbf16> to vector<128x128xbf16>
    %cst_119 = arith.constant dense<0.000000e+00> : vector<64x128xf32>
    %97 = tpu.matmul %94, %96, %cst_119 {dimension_numbers = #tpu.dot_dimension_numbers<[1], [0], [0], [1], [0, 0, 1, 1], [], []>} : vector<64x128xbf16>, vector<128x128xbf16>, vector<64x128xf32> -> vector<64x128xf32>
    %98 = arith.addf %92, %97 : vector<64x128xf32>
    %c1_120 = arith.constant 1 : index
    %c1_121 = arith.constant 1 : index
    %c0_122 = arith.constant 0 : index
    %99 = vector.load %arg8[%c1_120, %c1_121, %c0_122] : memref<10x10x128xbf16, #tpu.memory_space<vmem>>, vector<8x8x128xbf16>
    %100 = vector.shape_cast %99 : vector<8x8x128xbf16> to vector<64x128xbf16>
    %c1_123 = arith.constant 1 : index
    %c1_124 = arith.constant 1 : index
    %c0_125 = arith.constant 0 : index
    %c0_126 = arith.constant 0 : index
    %101 = vector.load %arg4[%c1_123, %c1_124, %c0_125, %c0_126] : memref<3x3x128x128xbf16, #tpu.memory_space<vmem>>, vector<1x1x128x128xbf16>
    %102 = vector.shape_cast %101 : vector<1x1x128x128xbf16> to vector<128x128xbf16>
    %cst_127 = arith.constant dense<0.000000e+00> : vector<64x128xf32>
    %103 = tpu.matmul %100, %102, %cst_127 {dimension_numbers = #tpu.dot_dimension_numbers<[1], [0], [0], [1], [0, 0, 1, 1], [], []>} : vector<64x128xbf16>, vector<128x128xbf16>, vector<64x128xf32> -> vector<64x128xf32>
    %104 = arith.addf %98, %103 : vector<64x128xf32>
    %c1_128 = arith.constant 1 : index
    %c2_129 = arith.constant 2 : index
    %c0_130 = arith.constant 0 : index
    %105 = vector.load %arg8[%c1_128, %c2_129, %c0_130] : memref<10x10x128xbf16, #tpu.memory_space<vmem>>, vector<8x8x128xbf16>
    %106 = vector.shape_cast %105 : vector<8x8x128xbf16> to vector<64x128xbf16>
    %c1_131 = arith.constant 1 : index
    %c2_132 = arith.constant 2 : index
    %c0_133 = arith.constant 0 : index
    %c0_134 = arith.constant 0 : index
    %107 = vector.load %arg4[%c1_131, %c2_132, %c0_133, %c0_134] : memref<3x3x128x128xbf16, #tpu.memory_space<vmem>>, vector<1x1x128x128xbf16>
    %108 = vector.shape_cast %107 : vector<1x1x128x128xbf16> to vector<128x128xbf16>
    %cst_135 = arith.constant dense<0.000000e+00> : vector<64x128xf32>
    %109 = tpu.matmul %106, %108, %cst_135 {dimension_numbers = #tpu.dot_dimension_numbers<[1], [0], [0], [1], [0, 0, 1, 1], [], []>} : vector<64x128xbf16>, vector<128x128xbf16>, vector<64x128xf32> -> vector<64x128xf32>
    %110 = arith.addf %104, %109 : vector<64x128xf32>
    %c2_136 = arith.constant 2 : index
    %c0_137 = arith.constant 0 : index
    %c0_138 = arith.constant 0 : index
    %111 = vector.load %arg8[%c2_136, %c0_137, %c0_138] : memref<10x10x128xbf16, #tpu.memory_space<vmem>>, vector<8x8x128xbf16>
    %112 = vector.shape_cast %111 : vector<8x8x128xbf16> to vector<64x128xbf16>
    %c2_139 = arith.constant 2 : index
    %c0_140 = arith.constant 0 : index
    %c0_141 = arith.constant 0 : index
    %c0_142 = arith.constant 0 : index
    %113 = vector.load %arg4[%c2_139, %c0_140, %c0_141, %c0_142] : memref<3x3x128x128xbf16, #tpu.memory_space<vmem>>, vector<1x1x128x128xbf16>
    %114 = vector.shape_cast %113 : vector<1x1x128x128xbf16> to vector<128x128xbf16>
    %cst_143 = arith.constant dense<0.000000e+00> : vector<64x128xf32>
    %115 = tpu.matmul %112, %114, %cst_143 {dimension_numbers = #tpu.dot_dimension_numbers<[1], [0], [0], [1], [0, 0, 1, 1], [], []>} : vector<64x128xbf16>, vector<128x128xbf16>, vector<64x128xf32> -> vector<64x128xf32>
    %116 = arith.addf %110, %115 : vector<64x128xf32>
    %c2_144 = arith.constant 2 : index
    %c1_145 = arith.constant 1 : index
    %c0_146 = arith.constant 0 : index
    %117 = vector.load %arg8[%c2_144, %c1_145, %c0_146] : memref<10x10x128xbf16, #tpu.memory_space<vmem>>, vector<8x8x128xbf16>
    %118 = vector.shape_cast %117 : vector<8x8x128xbf16> to vector<64x128xbf16>
    %c2_147 = arith.constant 2 : index
    %c1_148 = arith.constant 1 : index
    %c0_149 = arith.constant 0 : index
    %c0_150 = arith.constant 0 : index
    %119 = vector.load %arg4[%c2_147, %c1_148, %c0_149, %c0_150] : memref<3x3x128x128xbf16, #tpu.memory_space<vmem>>, vector<1x1x128x128xbf16>
    %120 = vector.shape_cast %119 : vector<1x1x128x128xbf16> to vector<128x128xbf16>
    %cst_151 = arith.constant dense<0.000000e+00> : vector<64x128xf32>
    %121 = tpu.matmul %118, %120, %cst_151 {dimension_numbers = #tpu.dot_dimension_numbers<[1], [0], [0], [1], [0, 0, 1, 1], [], []>} : vector<64x128xbf16>, vector<128x128xbf16>, vector<64x128xf32> -> vector<64x128xf32>
    %122 = arith.addf %116, %121 : vector<64x128xf32>
    %c2_152 = arith.constant 2 : index
    %c2_153 = arith.constant 2 : index
    %c0_154 = arith.constant 0 : index
    %123 = vector.load %arg8[%c2_152, %c2_153, %c0_154] : memref<10x10x128xbf16, #tpu.memory_space<vmem>>, vector<8x8x128xbf16>
    %124 = vector.shape_cast %123 : vector<8x8x128xbf16> to vector<64x128xbf16>
    %c2_155 = arith.constant 2 : index
    %c2_156 = arith.constant 2 : index
    %c0_157 = arith.constant 0 : index
    %c0_158 = arith.constant 0 : index
    %125 = vector.load %arg4[%c2_155, %c2_156, %c0_157, %c0_158] : memref<3x3x128x128xbf16, #tpu.memory_space<vmem>>, vector<1x1x128x128xbf16>
    %126 = vector.shape_cast %125 : vector<1x1x128x128xbf16> to vector<128x128xbf16>
    %cst_159 = arith.constant dense<0.000000e+00> : vector<64x128xf32>
    %127 = tpu.matmul %124, %126, %cst_159 {dimension_numbers = #tpu.dot_dimension_numbers<[1], [0], [0], [1], [0, 0, 1, 1], [], []>} : vector<64x128xbf16>, vector<128x128xbf16>, vector<64x128xf32> -> vector<64x128xf32>
    %128 = arith.addf %122, %127 : vector<64x128xf32>
    %c3_160 = arith.constant 3 : index
    %c0_161 = arith.constant 0 : index
    %c0_162 = arith.constant 0 : index
    %c0_163 = arith.constant 0 : index
    %129 = vector.load %arg1[%c3_160, %c0_161, %c0_162, %c0_163] : memref<4x9x9x16xbf16, #tpu.memory_space<vmem>>, vector<1x8x8x16xbf16>
    %130 = vector.shape_cast %129 : vector<1x8x8x16xbf16> to vector<8x8x16xbf16>
    %131 = vector.shape_cast %130 : vector<8x8x16xbf16> to vector<64x16xbf16>
    %c0_164 = arith.constant 0 : index
    %c0_165 = arith.constant 0 : index
    %132 = vector.load %arg5[%c0_164, %c0_165] : memref<16x128xbf16, #tpu.memory_space<vmem>>, vector<16x128xbf16>
    %cst_166 = arith.constant dense<0.000000e+00> : vector<64x128xf32>
    %133 = tpu.matmul %131, %132, %cst_166 {dimension_numbers = #tpu.dot_dimension_numbers<[1], [0], [0], [1], [0, 0, 1, 1], [], []>} : vector<64x16xbf16>, vector<16x128xbf16>, vector<64x128xf32> -> vector<64x128xf32>
    %134 = arith.addf %128, %133 : vector<64x128xf32>
    %c0_167 = arith.constant 0 : index
    %c0_168 = arith.constant 0 : index
    %135 = vector.load %arg6[%c0_167, %c0_168] : memref<1x128xf32, #tpu.memory_space<vmem>>, vector<1x128xf32>
    %136 = vector.broadcast %135 : vector<1x128xf32> to vector<64x128xf32>
    %137 = arith.addf %134, %136 : vector<64x128xf32>
    %cst_169 = arith.constant 0.000000e+00 : f32
    %138 = vector.broadcast %cst_169 : f32 to vector<64x128xf32>
    %139 = arith.maximumf %137, %138 : vector<64x128xf32>
    %c0_170 = arith.constant 0 : index
    %c0_171 = arith.constant 0 : index
    %140 = vector.load %arg7[%c0_170, %c0_171] : memref<64x128xf32, #tpu.memory_space<vmem>>, vector<64x128xf32>
    tpu.vector_store %arg7[%c0_170, %c0_171], %139 {strides = array<i32>} : memref<64x128xf32, #tpu.memory_space<vmem>>, vector<64x128xf32>,
    return
  }
  func.func @transform_0(%arg0: i32) -> (i32, i32, i32, i32) {
    %c0_i32 = arith.constant 0 : i32
    %c0_i32_0 = arith.constant 0 : i32
    %c0_i32_1 = arith.constant 0 : i32
    %c0_i32_2 = arith.constant 0 : i32
    return %arg0, %c0_i32, %c0_i32_0, %c0_i32_1 : i32, i32, i32, i32
  }
  func.func @transform_1(%arg0: i32) -> (i32, i32, i32, i32) {
    %c0_i32 = arith.constant 0 : i32
    %c0_i32_0 = arith.constant 0 : i32
    %c0_i32_1 = arith.constant 0 : i32
    %c0_i32_2 = arith.constant 0 : i32
    %c0_i32_3 = arith.constant 0 : i32
    return %c0_i32, %c0_i32_0, %c0_i32_1, %c0_i32_2 : i32, i32, i32, i32
  }
  func.func @transform_2(%arg0: i32) -> (i32, i32) {
    %c0_i32 = arith.constant 0 : i32
    %c0_i32_0 = arith.constant 0 : i32
    %c0_i32_1 = arith.constant 0 : i32
    return %c0_i32, %c0_i32_0 : i32, i32
  }
  func.func @transform_3(%arg0: i32) -> (i32, i32, i32, i32) {
    %c0_i32 = arith.constant 0 : i32
    %c0_i32_0 = arith.constant 0 : i32
    %c0_i32_1 = arith.constant 0 : i32
    %c0_i32_2 = arith.constant 0 : i32
    %c0_i32_3 = arith.constant 0 : i32
    return %c0_i32, %c0_i32_0, %c0_i32_1, %c0_i32_2 : i32, i32, i32, i32
  }
  func.func @transform_4(%arg0: i32) -> (i32, i32) {
    %c0_i32 = arith.constant 0 : i32
    %c0_i32_0 = arith.constant 0 : i32
    %c0_i32_1 = arith.constant 0 : i32
    return %c0_i32, %c0_i32_0 : i32, i32
  }
  func.func @transform_5(%arg0: i32) -> (i32, i32) {
    %c0_i32 = arith.constant 0 : i32
    %c0_i32_0 = arith.constant 0 : i32
    %c0_i32_1 = arith.constant 0 : i32
    return %c0_i32, %c0_i32_0 : i32, i32
  }
  func.func @transform_6(%arg0: i32) -> (i32, i32) {
    %c0_i32 = arith.constant 0 : i32
    %c0_i32_0 = arith.constant 0 : i32
    return %arg0, %c0_i32 : i32, i32
  }
}

</mosaic_0001>

<bundles_post_ra>
// kernel: basic_block_forward.1
= control target key start
LH: loop header
LB: loop body
LE: loop exit
PB: predicated region body
PF: predicated region fallthrough
CT: control target
= control target key end

     0   :  { %s5321_s21 = smov 0   ;;  %s6200_s0 = inlined_call_operand.vmem [shape: bf16[8,9,9,16], index: 0, kind: input, shape index: {}]   ;;  %s6201_s1 = inlined_call_operand.vmem [shape: bf16[3,3,16,128], index: 1, kind: input, shape index: {}]   ;;  %s6202_s2 = inlined_call_operand.vmem [shape: f32[1,128], index: 2, kind: input, shape index: {}]   ;;  %s6203_s3 = inlined_call_operand.vmem [shape: bf16[3,3,128,128], index: 3, kind: input, shape index: {}]   ;;  %s6204_s4 = inlined_call_operand.vmem [shape: bf16[16,128], index: 4, kind: input, shape index: {}]   ;;  %s6205_s5 = inlined_call_operand.vmem [shape: f32[1,128], index: 5, kind: input, shape index: {}]   ;;  %s6206_s6 = inlined_call_operand.vmem [shape: f32[128,128], index: 6, kind: output, shape index: {}]  }
   0x1 LB: > { %s4060_s22 = sadd.s32 4294967295, %s5283_s21   ;;  %p4064_p0 = scmp.ge.s32.totalorder %s5283_s21, 1  ;;  %s5283_s21 = sphi %s5321_s21, %s16_s21  }
   0x2   : > { %p214_p1 = scmp.lt.s32.totalorder %s5283_s21, 3 }
   0x4   : > { %p215_p2 = pnand %p4064_p0, %p214_p1 }
   0x5   : > { %v5155_v0 = vld [vmem:[%s6201_s1 + $0x8] sm:$0xff] (!%p215_p2)   ;;  %s4065_s25 = sshll.u32 (!%p215_p2), %s4060_s22, 2  ;;  %v5157_v1 = vld [vmem:[%s6201_s1] sm:$0xff] (!%p215_p2)   ;;  %vm307_vm0 = vcmask (!%p215_p2), 130048   ;;  %v5345_v2 = vld [vmem:[%s6201_s1 + $0x10] sm:$0xff] (!%p215_p2)   ;;  %vm1833_vm4 = vcmask (!%p215_p2), 1043456  }
   0x6   : > { %218 = sbr.rel (%p215_p2) target bundleno = 820 (0x334), region = 44  ;;  %p246_p3 = scmp.lt.s32.totalorder (!%p215_p2), %s4065_s25, 7  ;;  %4693 = vmatprep.subr.bf16.mxu0 (!%p215_p2), %v5155_v0  ;;  %vm504_vm1 = vsmask.f32 (!%p215_p2), 3328  ;;  %vm505_vm2 = vsmask.f32 (!%p215_p2), 7440 }
   0x7   : > { %4694 = vmatpush3.bf16.msra.mxu0 (!%p215_p2), %v5155_v0  ;;  %vm5371_vm3 = vmor (!%p215_p2), %vm504_vm1, %vm505_vm2  ;;  %v5380_v48 = vld [vmem:[%s6201_s1 + $0x18] sm:$0xff] (!%p215_p2)   ;;  %v5188_v57 = vld [vmem:[%s6203_s3 + $0x80] sm:$0xff] (!%p215_p2)   ;;  %vm1834_vm5 = vsmask.f32 (!%p215_p2), 7938  ;;  %vm1839_vm6 = vcmask (!%p215_p2), 1040384   ;;  %vm2338_vm8 = vcmask (!%p215_p2), 1042432  }
   0x8   : > { %4703 = vmatprep.subr.bf16.mxu0 (!%p215_p2), %v5157_v1  ;;  %4831 = vmatprep.subr.bf16.mxu1 (!%p215_p2), %v5188_v57  ;;  %vm1840_vm7 = vsmask.f32 (!%p215_p2), 256  ;;  %vm2339_vm9 = vcmask (!%p215_p2), 1046532   ;;  %vm5713_vm10 = vmand (!%p215_p2), %vm1833_vm4, %vm1834_vm5  ;;  %v5268_v38 = vld [vmem:[%s6203_s3 + $0x220] sm:$0xff] (!%p215_p2)   ;;  %s4067_s20 = sshll.u32 (!%p215_p2), %s4060_s22, 3 }
   0x9   : > { %4832 = vmatpush3.bf16.msra.mxu1 (!%p215_p2), %v5188_v57  ;;  %vm5720_vm11 = vmand (!%p215_p2), %vm1839_vm6, %vm1840_vm7  ;;  %p253_p4 = scmp.lt.s32.totalorder (!%p215_p2), %s4067_s20, 15 }
   0xa   : > { %vm5745_vm12 = vmor (!%p215_p2), %vm2338_vm8, %vm2339_vm9 }
   0xd   : > { %s6216_s25 = smov (!%p246_p3, %s4065_s25), 7  ;;  %s6218_s20 = smov (!%p253_p4, %s4067_s20), 15 }
   0xe   : > { %s5145_s28 = smul.u32 72, %s6216_s25  ;;  %s4068_s25 = sshll.u32 %s6218_s20, 3 }
   0xf   : > { %s6187_s27 = scalar_lea.vmem %s6206_s6, %s4068_s25 }
  0x10   : > { %s5340_s7 = scalar_lea.vmem %s6200_s0, %s5145_s28 }
  0x11   : > { %v5156_v3 = vld [vmem:[%s5340_s7 + $0x48] ss:$8 sps:$4 sm:$0xff]   ;;  %v5158_v4 = vld [vmem:[%s5340_s7 + $0x58] ss:$8 sps:$4 sm:$0xff]   ;;  %v489_v9 = vld [vmem:[%s5340_s7 + $0x4] sm:$0x1] }
  0x12   : > { %4695 = vmatprep.mubr.msk.bf16.mxu0 %vm307_vm0, %v5156_v3  ;;  %v5159_v5 = vld [vmem:[%s5340_s7 + $0x68] ss:$8 sps:$4 sm:$0xff]   ;;  %v5160_v6 = vld [vmem:[%s5340_s7 + $0x78] ss:$8 sps:$4 sm:$0xff]   ;;  %v491_v11 = vld [vmem:[%s5340_s7 + $0xc] sm:$0x1] }
  0x13   : > { %4696 = vmatmul.mubr.msk.bf16.vlgmr.msra.gmra.mrb[0].mxu0 %vm307_vm0, %v5158_v4  ;;  %v5161_v7 = vld [vmem:[%s5340_s7] ss:$8 sps:$4 sm:$0xff]   ;;  %v517_v15 = vshll.u32 %v489_v9, 16  ;;  %v492_v17 = vld [vmem:[%s5340_s7 + $0x10] sm:$0xf]  ;;  %v531_v21 = vshll.u32 %v491_v11, 16 }
  0x14   : > { %4704 = vmatpush3.bf16.msra.mxu0 %v5157_v1  ;;  %4699 = vmatprep.mubr.msk.bf16.mxu0 %vm307_vm0, %v5159_v5  ;;  %v488_v8 = vld [vmem:[%s5340_s7] sm:$0xf]  ;;  %v490_v10 = vld [vmem:[%s5340_s7 + $0x8] sm:$0xf]  ;;  %v494_v22 = vld [vmem:[%s5340_s7 + $0x18] sm:$0xf] }
  0x15   : > { %4713 = vmatprep.subr.bf16.mxu0 %v5345_v2  ;;  %v508_v12 = vshrl.u32 %v488_v8, 16  ;;  %v511_v13 = vshll.u32 %v488_v8, 16  ;;  %v522_v14 = vshrl.u32 %v490_v10, 16  ;;  %v525_v16 = vshll.u32 %v490_v10, 16  ;;  %v5163_v26 = vld [vmem:[%s5340_s7 + $0x10] ss:$8 sps:$4 sm:$0xff]  }
  0x16   : > { %v536_v24 = vshrl.u32 %v492_v17, 16  ;;  %v539_v25 = vshll.u32 %v492_v17, 16  ;;  %v493_v28 = vld [vmem:[%s5340_s7 + $0x14] sm:$0x1]  ;;  %v550_v29 = vshrl.u32 %v494_v22, 16  ;;  %v553_v30 = vshll.u32 %v494_v22, 16 }
  0x17   : > { %v510_v18 = vrot.slane %v508_v12, 4  ;;  %v513_v19 = vrot.slane %v511_v13, 5  ;;  %v524_v20 = vrot.slane %v522_v14, 4  ;;  %v527_v23 = vrot.slane %v525_v16, 5  ;;  %v496_v31 = vld [vmem:[%s5340_s7 + $0x20] sm:$0xf] }
  0x18   : > { %v5164_v32 = vld [vmem:[%s5340_s7 + $0x20] ss:$8 sps:$4 sm:$0xff]   ;;  %v519_v33 = vrot.slane %v517_v15, 5  ;;  %v495_v35 = vld [vmem:[%s5340_s7 + $0x1c] sm:$0x1]  ;;  %v538_v36 = vrot.slane %v536_v24, 4 }
  0x19   : > { %v514_v27 = vor.u32 %v513_v19, %v510_v18  ;;  %v528_v34 = vor.u32 %v527_v23, %v524_v20  ;;  %v541_v37 = vrot.slane %v539_v25, 5  ;;  %v533_v40 = vrot.slane %v531_v21, 5  ;;  %v498_v43 = vld [vmem:[%s5340_s7 + $0x28] sm:$0xf]  ;;  %v497_v46 = vld [vmem:[%s5340_s7 + $0x24] sm:$0x1] }
  0x1a   : > { %v552_v41 = vrot.slane %v550_v29, 4  ;;  %v555_v42 = vrot.slane %v553_v30, 5  ;;  %v545_v45 = vshll.u32 %v493_v28, 16  ;;  %v564_v47 = vshrl.u32 %v496_v31, 16  ;;  %v499_v50 = vld [vmem:[%s5340_s7 + $0x2c] sm:$0x1] }
  0x1b   : > { %4700 = vmatmul.mubr.msk.bf16.gmra.mrb[4].mxu0 %vm307_vm0, %v5160_v6  ;;  %v515_v39 = vrot.slane %v514_v27, 4  ;;  %v529_v44 = vrot.slane %v528_v34, 4  ;;  %v559_v49 = vshll.u32 %v495_v35, 16  ;;  %v567_v51 = vshll.u32 %v496_v31, 16  ;;  %v500_v56 = vld [vmem:[%s5340_s7 + $0x30] sm:$0xf] }
  0x1c   : > { %4705 = vmatprep.mubr.msk.bf16.mxu0 %vm307_vm0, %v5161_v7  ;;  %v542_v53 = vor.u32 %v541_v37, %v538_v36  ;;  %v566_v54 = vrot.slane %v564_v47, 4  ;;  %v578_v55 = vshrl.u32 %v498_v43, 16  ;;  %v556_v59 = vor.u32 %v555_v42, %v552_v41  ;;  %v502_v62 = vld [vmem:[%s5340_s7 + $0x38] sm:$0xf]  ;;  %v503_v17 = vld [vmem:[%s5340_s7 + $0x3c] sm:$0x1] }
  0x1d   : > { %v520_v52 = vsel %vm5371_vm3, %v515_v39, %v519_v33  ;;  %v534_v58 = vsel %vm5371_vm3, %v529_v44, %v533_v40  ;;  %v569_v60 = vrot.slane %v567_v51, 5  ;;  %v573_v61 = vshll.u32 %v497_v46, 16  ;;  %v5165_v4 = vld [vmem:[%s5340_s7 + $0x30] ss:$8 sps:$4 sm:$0xff]   ;;  %v5412_v40 = vld [vmem:[%s6201_s1 + $0x20] sm:$0xff]  }
  0x1e   : > { %v547_v63 = vrot.slane %v545_v45, 5  ;;  %v580_v0 = vrot.slane %v578_v55, 4  ;;  %v581_v1 = vshll.u32 %v498_v43, 16  ;;  %v587_v3 = vshll.u32 %v499_v50, 16  ;;  %v4146_v41 = vld [vmem:[%s5340_s7 + $0x90] sm:$0xf] }
  0x1f   : > { %v561_v5 = vrot.slane %v559_v49, 5  ;;  %v570_v6 = vor.u32 %v569_v60, %v566_v54  ;;  %v592_v7 = vshrl.u32 %v500_v56, 16  ;;  %v595_v8 = vshll.u32 %v500_v56, 16  ;;  %v4148_v42 = vld [vmem:[%s5340_s7 + $0x98] sm:$0xf] }
  0x20   : > { %v4099_v9 = vcombine.low %v520_v52, %v534_v58  ;;  %v543_v10 = vrot.slane %v542_v53, 4  ;;  %v583_v11 = vrot.slane %v581_v1, 5  ;;  %v557_v12 = vrot.slane %v556_v59, 4  ;;  %v4150_v47 = vld [vmem:[%s5340_s7 + $0xa0] sm:$0xf] }
  0x21   : > { %v575_v13 = vrot.slane %v573_v61, 5  ;;  %v589_v14 = vrot.slane %v587_v3, 5  ;;  %v606_v15 = vshrl.u32 %v502_v62, 16  ;;  %v594_v18 = vrot.slane %v592_v7, 4  ;;  %v4147_v49 = vld [vmem:[%s5340_s7 + $0x94] sm:$0x1] }
  0x22   : > { %v584_v16 = vor.u32 %v583_v11, %v580_v0  ;;  %v597_v19 = vrot.slane %v595_v8, 5  ;;  %v609_v20 = vshll.u32 %v502_v62, 16  ;;  %v571_v21 = vrot.slane %v570_v6, 4  ;;  %v4149_v50 = vld [vmem:[%s5340_s7 + $0x9c] sm:$0x1] }
  0x23   : > { %4706 = vmatmul.mubr.msk.bf16.vlgmr.msra.gmra.mrb[0].mxu0 %vm307_vm0, %v5163_v26  ;;  %v608_v22 = vrot.slane %v606_v15, 4  ;;  %v548_v25 = vsel %vm5371_vm3, %v543_v10, %v547_v63  ;;  %v562_v27 = vsel %vm5371_vm3, %v557_v12, %v561_v5  ;;  %v615_v30 = vshll.u32 %v503_v17, 16  ;;  %v4152_v53 = vld [vmem:[%s5340_s7 + $0xa8] sm:$0xf]  ;;  %v5167_v54 = vld [vmem:[%s5340_s7 + $0x90] ss:$8 sps:$4 sm:$0xff]  }
  0x24   : > { %4714 = vmatpush3.bf16.msra.mxu0 %v5345_v2  ;;  %4709 = vmatprep.mubr.msk.bf16.mxu0 %vm307_vm0, %v5164_v32  ;;  %v501_v2 = vld [vmem:[%s5340_s7 + $0x34] sm:$0x1]  ;;  %v585_v23 = vrot.slane %v584_v16, 4  ;;  %v611_v24 = vrot.slane %v609_v20, 5  ;;  %v598_v28 = vor.u32 %v597_v19, %v594_v18  ;;  %v576_v31 = vsel %vm5371_vm3, %v571_v21, %v575_v13  ;;  %v4151_v61 = vld [vmem:[%s5340_s7 + $0xa4] sm:$0x1] }
  0x25   : > { %4723 = vmatprep.subr.bf16.mxu0 %v5380_v48  ;;  %v601_v26 = vshll.u32 %v501_v2, 16  ;;  %v4100_v33 = vcombine.low %v548_v25, %v562_v27  ;;  %v617_v39 = vrot.slane %v615_v30, 5  ;;  %v988_v45 = vshrl.u32 %v4146_v41, 16  ;;  %v4153_v3 = vld [vmem:[%s5340_s7 + $0xac] sm:$0x1] }
  0x26   : > { %v612_v29 = vor.u32 %v611_v24, %v608_v22  ;;  %v590_v32 = vsel %vm5371_vm3, %v585_v23, %v589_v14  ;;  %v599_v36 = vrot.slane %v598_v28, 4  ;;  %v991_v46 = vshll.u32 %v4146_v41, 16  ;;  %v5170_v2 = vld [vmem:[%s5340_s7 + $0xb0] ss:$8 sps:$4 sm:$0xff]   ;;  %v5443_v16 = vld [vmem:[%s6201_s1 + $0x28] sm:$0xff]  }
  0x27   : > { %v603_v34 = vrot.slane %v601_v26, 5  ;;  %v4101_v35 = vcombine.low %v576_v31, %v590_v32  ;;  %v1002_v51 = vshrl.u32 %v4148_v42, 16  ;;  %v1005_v52 = vshll.u32 %v4148_v42, 16  ;;  %v4155_v17 = vld [vmem:[%s5340_s7 + $0xb4] sm:$0x1] }
  0x28   : > { %v613_v37 = vrot.slane %v612_v29, 4  ;;  %v990_v55 = vrot.slane %v988_v45, 4  ;;  %v993_v56 = vrot.slane %v991_v46, 5  ;;  %v1016_v57 = vshrl.u32 %v4150_v47, 16  ;;  %v4156_v23 = vld [vmem:[%s5340_s7 + $0xb8] sm:$0xf] }
  0x29   : > { %v604_v43 = vsel %vm5371_vm3, %v599_v36, %v603_v34  ;;  %v1019_v58 = vshll.u32 %v4150_v47, 16  ;;  %v997_v59 = vshll.u32 %v4147_v49, 16  ;;  %v1011_v60 = vshll.u32 %v4149_v50, 16  ;;  %v4157_v24 = vld [vmem:[%s5340_s7 + $0xbc] sm:$0x1] }
  0x2a   : > { %v618_v44 = vsel %vm5371_vm3, %v613_v37, %v617_v39  ;;  %v1004_v62 = vrot.slane %v1002_v51, 4  ;;  %v1007_v63 = vrot.slane %v1005_v52, 5  ;;  %v1030_v0 = vshrl.u32 %v4152_v53, 16  ;;  %v4158_v25 = vld [vmem:[%s5340_s7 + $0xc0] sm:$0xf] }
  0x2b   : > { %4710 = vmatmul.mubr.msk.bf16.gmra.mrb[4].mxu0 %vm307_vm0, %v5165_v4  ;;  %v1033_v1 = vshll.u32 %v4152_v53, 16  ;;  %v4154_v4 = vld [vmem:[%s5340_s7 + $0xb0] sm:$0xf]  ;;  %v994_v5 = vor.u32 %v993_v56, %v990_v55  ;;  %v1018_v6 = vrot.slane %v1016_v57, 4  ;;  %v1021_v7 = vrot.slane %v1019_v58, 5 }
  0x2c   : > { %4715 = vmatprep.mubr.msk.bf16.mxu0 %vm307_vm0, %v4099_v9  ;;  %v1025_v8 = vshll.u32 %v4151_v61, 16  ;;  %v5169_v9 = vld [vmem:[%s5340_s7 + $0xa0] ss:$8 sps:$4 sm:$0xff]   ;;  %v5435_v10 = vrot.slane %v997_v59, 5  ;;  %v5437_v11 = vrot.slane %v1011_v60, 5  ;;  %v1008_v12 = vor.u32 %v1007_v63, %v1004_v62 }
  0x2d   : > { %v1032_v13 = vrot.slane %v1030_v0, 4  ;;  %v1035_v14 = vrot.slane %v1033_v1, 5  ;;  %v1039_v15 = vshll.u32 %v4153_v3, 16  ;;  %v1044_v18 = vshrl.u32 %v4154_v4, 16  ;;  %v4160_v29 = vld [vmem:[%s5340_s7 + $0xc8] sm:$0xf] }
  0x2e   : > { %v1047_v19 = vshll.u32 %v4154_v4, 16  ;;  %v5446_v20 = vrot.slane %v994_v5, 4  ;;  %v1022_v21 = vor.u32 %v1021_v7, %v1018_v6  ;;  %v5448_v22 = vrot.slane %v1025_v8, 5  ;;  %v5171_v39 = vld [vmem:[%s5340_s7 + $0xc0] ss:$8 sps:$4 sm:$0xff]  }
  0x2f   : > { %v5453_v26 = vrot.slane %v1008_v12, 4  ;;  %v1036_v27 = vor.u32 %v1035_v14, %v1032_v13  ;;  %v5455_v28 = vrot.slane %v1039_v15, 5  ;;  %v1046_v30 = vrot.slane %v1044_v18, 4  ;;  %v4159_v46 = vld [vmem:[%s5340_s7 + $0xc4] sm:$0x1] }
  0x30   : > { %v1049_v31 = vrot.slane %v1047_v19, 5  ;;  %v1058_v32 = vshrl.u32 %v4156_v23, 16  ;;  %v5461_v34 = vrot.slane %v1022_v21, 4  ;;  %v1072_v36 = vshrl.u32 %v4158_v25, 16  ;;  %v4161_v50 = vld [vmem:[%s5340_s7 + $0xcc] sm:$0x1] }
  0x31   : > { %v1075_v37 = vshll.u32 %v4158_v25, 16  ;;  %v1086_v41 = vshrl.u32 %v4160_v29, 16  ;;  %v1089_v42 = vshll.u32 %v4160_v29, 16  ;;  %v1067_v45 = vshll.u32 %v4157_v24, 16  ;;  %v4211_v56 = vld [vmem:[%s5340_s7 + $0x8] sm:$0xf] }
  0x32   : > { %v1060_v47 = vrot.slane %v1058_v32, 4  ;;  %v1074_v51 = vrot.slane %v1072_v36, 4  ;;  %v1000_v57 = vsel %vm5371_vm3, %v5446_v20, %v5435_v10  ;;  %v1014_v58 = vsel %vm5371_vm3, %v5453_v26, %v5437_v11  ;;  %v4212_v61 = vld [vmem:[%s5340_s7 + $0xc] sm:$0x1]  ;;  %v4213_v62 = vld [vmem:[%s5340_s7 + $0x10] sm:$0xf] }
  0x33   : > { %4716 = vmatmul.mubr.msk.bf16.vlgmr.msra.gmra.mrb[0].mxu0 %vm307_vm0, %v4100_v33  ;;  %v1061_v33 = vshll.u32 %v4156_v23, 16  ;;  %v1077_v52 = vrot.slane %v1075_v37, 5  ;;  %v1091_v53 = vrot.slane %v1089_v42, 5  ;;  %v5472_v55 = vrot.slane %v1067_v45, 5  ;;  %v4215_v4 = vld [vmem:[%s5340_s7 + $0x18] sm:$0xf] }
  0x34   : > { %4724 = vmatpush3.bf16.msra.mxu0 %v5380_v48  ;;  %4719 = vmatprep.mubr.msk.bf16.mxu0 %vm307_vm0, %v4101_v35  ;;  %v4102_v48 = vcombine.low %v604_v43, %v618_v44  ;;  %v1053_v35 = vshll.u32 %v4155_v17, 16  ;;  %v5172_v43 = vld [vmem:[%s5340_s7 + $0xd8] ss:$8 sps:$4 sm:$0xff]   ;;  %v5466_v44 = vrot.slane %v1036_v27, 4  ;;  %v1081_v60 = vshll.u32 %v4159_v46, 16 }
  0x35   : > { %4733 = vmatprep.subr.bf16.mxu0 %v5412_v40  ;;  %v1063_v49 = vrot.slane %v1061_v33, 5  ;;  %v1468_v0 = vshrl.u32 %v4211_v56, 16  ;;  %v1471_v1 = vshll.u32 %v4211_v56, 16  ;;  %v1482_v3 = vshrl.u32 %v4213_v62, 16  ;;  %v5174_v5 = vld [vmem:[%s5340_s7 + $0xe8] ss:$8 sps:$4 sm:$0xff]  }
  0x36   : > { %v1078_v6 = vor.u32 %v1077_v52, %v1074_v51  ;;  %v1095_v8 = vshll.u32 %v4161_v50, 16  ;;  %v4217_v12 = vld [vmem:[%s5340_s7 + $0x20] sm:$0xf]  ;;  %v1477_v15 = vshll.u32 %v4212_v61, 16  ;;  %v4216_v18 = vld [vmem:[%s5340_s7 + $0x1c] sm:$0x1]  ;;  %v1042_v11 = vsel %vm5371_vm3, %v5466_v44, %v5455_v28 }
  0x37   : > { %v1064_v63 = vor.u32 %v1063_v49, %v1060_v47  ;;  %v1470_v13 = vrot.slane %v1468_v0, 4  ;;  %v1473_v14 = vrot.slane %v1471_v1, 5  ;;  %v1484_v17 = vrot.slane %v1482_v3, 4  ;;  %v5175_v19 = vld [vmem:[%s5340_s7 + $0xf8] ss:$8 sps:$4 sm:$0xff]   ;;  %v5501_v33 = vld [vmem:[%s6201_s1 + $0x30] sm:$0xff]  }
  0x38   : > { %v5495_v21 = vrot.slane %v1081_v60, 5  ;;  %v1496_v24 = vshrl.u32 %v4215_v4, 16  ;;  %v1499_v25 = vshll.u32 %v4215_v4, 16  ;;  %v4219_v32 = vld [vmem:[%s5340_s7 + $0x28] sm:$0xf]  ;;  %v5505_v36 = vrot.slane %v1095_v8, 5 }
  0x39   : > { %v1474_v27 = vor.u32 %v1473_v14, %v1470_v13  ;;  %v5508_v42 = vrot.slane %v1078_v6, 4  ;;  %v5512_v45 = vrot.slane %v1477_v15, 5  ;;  %v4220_v51 = vld [vmem:[%s5340_s7 + $0x2c] sm:$0x1]  ;;  %v1524_v52 = vshrl.u32 %v4219_v32, 16 }
  0x3a   : > { %v1498_v46 = vrot.slane %v1496_v24, 4  ;;  %v1501_v47 = vrot.slane %v1499_v25, 5  ;;  %v4222_v60 = vld [vmem:[%s5340_s7 + $0x34] sm:$0x1]  ;;  %v1527_v61 = vshll.u32 %v4219_v32, 16  ;;  %v1533_v4 = vshll.u32 %v4220_v51, 16 }
  0x3b   : > { %4720 = vmatmul.mubr.msk.bf16.gmra.mrb[4].mxu0 %vm307_vm0, %v4102_v48  ;;  %v1088_v48 = vrot.slane %v1086_v41, 4  ;;  %v1505_v41 = vshll.u32 %v4216_v18, 16  ;;  %v1526_v1 = vrot.slane %v1524_v52, 4  ;;  %v5543_v14 = vld [vmem:[%s5340_s7 + $0x3c] sm:$0x1] }
  0x3c   : > { %4725 = vmatprep.mubr.msk.bf16.mxu0 %vm307_vm0, %v5167_v54  ;;  %v5470_v54 = vrot.slane %v1053_v35, 5  ;;  %v5503_v35 = vrot.slane %v1064_v63, 4  ;;  %v1529_v3 = vrot.slane %v1527_v61, 5  ;;  %v1502_v6 = vor.u32 %v1501_v47, %v1498_v46  ;;  %v5556_v10 = vld [vmem:[%s5340_s7 + $0x44] sm:$0x1] }
  0x3d   : > { %v1092_v7 = vor.u32 %v1091_v53, %v1088_v48  ;;  %v5519_v48 = vrot.slane %v1474_v27, 4  ;;  %v5528_v0 = vrot.slane %v1505_v41, 5  ;;  %v1535_v24 = vrot.slane %v1533_v4, 5  ;;  %v5187_v51 = vld [vmem:[%s5340_s7 + $0x80] ss:$8 sps:$4 sm:$0xff]  }
  0x3e   : > { %v1530_v13 = vor.u32 %v1529_v3, %v1526_v1  ;;  %v1070_v28 = vsel %vm5371_vm3, %v5503_v35, %v5472_v55  ;;  %v1561_v44 = vshll.u32 %v5543_v14, 16  ;;  %v1084_v41 = vsel %vm5371_vm3, %v5508_v42, %v5495_v21  ;;  %v5184_v21 = vld [vmem:[%s6201_s1 + $0x40] sm:$0xff]   ;;  %v5183_v42 = vld [vmem:[%s5340_s7 + $0x50] ss:$8 sps:$4 sm:$0xff]   ;;  %v5192_v14 = vld [vmem:[%s6203_s3 + $0x48] sm:$0xff]  }
  0x3f   : > { %v1480_v52 = vsel %vm5371_vm3, %v5519_v48, %v5512_v45 }
  0x43   : > { %4726 = vmatmul.mubr.msk.bf16.vlgmr.msra.gmra.mrb[0].mxu0 %vm307_vm0, %v5169_v9  ;;  %v4214_v9 = vld [vmem:[%s5340_s7 + $0x14] sm:$0x1] }
  0x44   : > { %4734 = vmatpush3.bf16.msra.mxu0 %v5412_v40  ;;  %4729 = vmatprep.mubr.msk.bf16.mxu0 %vm307_vm0, %v5170_v2  ;;  %v1050_v40 = vor.u32 %v1049_v31, %v1046_v30  ;;  %v1485_v2 = vshll.u32 %v4213_v62, 16  ;;  %v1491_v29 = vshll.u32 %v4214_v9, 16  ;;  %v1510_v30 = vshrl.u32 %v4217_v12, 16  ;;  %v5176_v62 = vld [vmem:[%s5340_s7 + $0x108] ss:$8 sps:$4 sm:$0xff]  }
  0x45   : > { %4743 = vmatprep.subr.bf16.mxu0 %v5443_v16  ;;  %v1513_v31 = vshll.u32 %v4217_v12, 16  ;;  %v1547_v9 = vshll.u32 %v4222_v60, 16  ;;  %v4164_v12 = vcombine.low %v1000_v57, %v1014_v58  ;;  %v1503_v57 = vrot.slane %v1502_v6, 4 }
  0x46   : > { %v5484_v59 = vrot.slane %v1050_v40, 4  ;;  %v1487_v23 = vrot.slane %v1485_v2, 5  ;;  %v4221_v40 = vld [vmem:[%s5340_s7 + $0x30] sm:$0xf]  ;;  %v1512_v49 = vrot.slane %v1510_v30, 4  ;;  %v5521_v53 = vrot.slane %v1491_v29, 5 }
  0x47   : > { %v1515_v50 = vrot.slane %v1513_v31, 5  ;;  %v1541_v8 = vshll.u32 %v4221_v40, 16  ;;  %v4225_v2 = vld [vmem:[%s5340_s7 + $0x40] sm:$0xf]  ;;  %v1549_v25 = vrot.slane %v1547_v9, 5  ;;  %v1508_v61 = vsel %vm5371_vm3, %v1503_v57, %v5528_v0  ;;  %v5189_v9 = vld [vmem:[%s6203_s3 + $0x88] sm:$0xff]  }
  0x48   : > { %v1488_v37 = vor.u32 %v1487_v23, %v1484_v17  ;;  %v1028_v23 = vsel %vm5371_vm3, %v5461_v34, %v5448_v22  ;;  %v1566_v20 = vshrl.u32 %v4225_v2, 16  ;;  %v1056_v22 = vsel %vm5371_vm3, %v5484_v59, %v5470_v54  ;;  %v5179_v54 = vld [vmem:[%s6201_s1 + $0x38] sm:$0xff]   ;;  %4833 = vmatprep.subr.bf16.mxu1 %v5189_v9  ;;  %v5202_v57 = vld [vmem:[%s6203_s3 + $0x70] sm:$0xff]  }
  0x49   : > { %v1543_v17 = vrot.slane %v1541_v8, 5  ;;  %v1531_v34 = vrot.slane %v1530_v13, 4  ;;  %v1569_v31 = vshll.u32 %v4225_v2, 16  ;;  %v4166_v59 = vcombine.low %v1056_v22, %v1070_v28  ;;  %v5190_v2 = vld [vmem:[%s6203_s3 + $0x40] sm:$0xff]   ;;  %4834 = vmatpush3.bf16.msra.mxu1 %v5189_v9 }
  0x4a   : > { %v5526_v63 = vrot.slane %v1488_v37, 4  ;;  %v1568_v32 = vrot.slane %v1566_v20, 4  ;;  %v1575_v37 = vshll.u32 %v5556_v10, 16  ;;  %v5285_v13 = vmov 0   ;;  %v5200_v10 = vld [vmem:[%s6203_s3 + $0x68] sm:$0xff]   ;;  %v5201_v20 = vld [vmem:[%s6203_s3 + $0xb8] sm:$0xff]  }
  0x4b   : > { %4730 = vmatmul.mubr.msk.bf16.gmra.mrb[4].mxu0 %vm307_vm0, %v5171_v39  ;;  %v4218_v39 = vld [vmem:[%s5340_s7 + $0x24] sm:$0x1]  ;;  %v1571_v35 = vrot.slane %v1569_v31, 5  ;;  %v1536_v48 = vsel %vm5371_vm3, %v1531_v34, %v1535_v24  ;;  %1718 = vst [vmem:[#allocation2 + $0x18] sm:$0xf] %v5285_v13  ;;  %v5204_v24 = vld [vmem:[%s6203_s3 + $0x78] sm:$0xff]  }
  0x4c   : > { %4735 = vmatprep.mubr.msk.bf16.mxu0 %vm307_vm0, %v5172_v43  ;;  %v5510_v43 = vrot.slane %v1092_v7, 4  ;;  %v1519_v56 = vshll.u32 %v4218_v39, 16  ;;  %v1516_v7 = vor.u32 %v1515_v50, %v1512_v49  ;;  %v4165_v39 = vcombine.low %v1028_v23, %v1042_v11  ;;  %v5181_v49 = vld [vmem:[%s5340_s7 + $0x28] ss:$8 sps:$4 sm:$0xff]   ;;  %1719 = vst [vmem:[#allocation2 + $0x1c] sm:$0x1] %v5285_v13 }
  0x4d   : > { %v5186_v50 = vld [vmem:[%s5340_s7 + $0x70] ss:$8 sps:$4 sm:$0xff]   ;;  %v1572_v45 = vor.u32 %v1571_v35, %v1568_v32  ;;  %v1577_v6 = vrot.slane %v1575_v37, 5  ;;  %1712 = vst [vmem:[#allocation2] sm:$0xf] %v5285_v13  ;;  %v5197_v23 = vld [vmem:[%s6203_s3 + $0xa8] sm:$0xff]  }
  0x4e   : > { %v5553_v26 = vrot.slane %v1519_v56, 5  ;;  %v1517_v58 = vrot.slane %v1516_v7, 4  ;;  %v1098_v46 = vsel %vm5371_vm3, %v5510_v43, %v5505_v36  ;;  %v5182_v36 = vld [vmem:[%s5340_s7 + $0x38] ss:$8 sps:$4 sm:$0xff]   ;;  %v1494_v56 = vsel %vm5371_vm3, %v5526_v63, %v5521_v53  ;;  %1713 = vst [vmem:[#allocation2 + $0x4] sm:$0x1] %v5285_v13 }
  0x4f   : > { %v4167_v47 = vcombine.low %v1084_v41, %v1098_v46  ;;  %v5185_v43 = vld [vmem:[%s5340_s7 + $0x60] ss:$8 sps:$4 sm:$0xff]   ;;  %v4229_v60 = vcombine.low %v1480_v52, %v1494_v56  ;;  %1714 = vst [vmem:[#allocation2 + $0x8] sm:$0xf] %v5285_v13  ;;  %1715 = vst [vmem:[#allocation2 + $0xc] sm:$0x1] %v5285_v13 }
  0x50   : > { %1716 = vst [vmem:[#allocation2 + $0x10] sm:$0xf] %v5285_v13  ;;  %1717 = vst [vmem:[#allocation2 + $0x14] sm:$0x1] %v5285_v13  ;;  %v5198_v11 = vld [vmem:[%s6203_s3 + $0x60] sm:$0xff]  }
  0x51   : > { %1720 = vst [vmem:[#allocation2 + $0x20] sm:$0xf] %v5285_v13  ;;  %1721 = vst [vmem:[#allocation2 + $0x24] sm:$0x1] %v5285_v13 }
  0x52   : > { %1722 = vst [vmem:[#allocation2 + $0x28] sm:$0xf] %v5285_v13  ;;  %1723 = vst [vmem:[#allocation2 + $0x2c] sm:$0x1] %v5285_v13 }
  0x53   : > { %4736 = vmatmul.mubr.msk.bf16.vlgmr.msra.gmra.mrb[0].mxu0 %vm307_vm0, %v5174_v5  ;;  %v4223_v5 = vld [vmem:[%s5340_s7 + $0x38] sm:$0xf]  ;;  %1724 = vst [vmem:[#allocation2 + $0x30] sm:$0xf] %v5285_v13  ;;  %1725 = vst [vmem:[#allocation2 + $0x34] sm:$0x1] %v5285_v13 }
  0x54   : > { %4744 = vmatpush3.bf16.msra.mxu0 %v5443_v16  ;;  %4739 = vmatprep.mubr.msk.bf16.mxu0 %vm307_vm0, %v5175_v19  ;;  %v1538_v16 = vshrl.u32 %v4221_v40, 16  ;;  %v1552_v18 = vshrl.u32 %v4223_v5, 16  ;;  %v1555_v19 = vshll.u32 %v4223_v5, 16  ;;  %v5178_v40 = vld [vmem:[%s5340_s7 + $0x8] ss:$8 sps:$4 sm:$0xff]   ;;  %v1573_v5 = vrot.slane %v1572_v45, 4 }
  0x55   : > { %4753 = vmatprep.subr.bf16.mxu0 %v5501_v33  ;;  %1726 = vst [vmem:[#allocation2 + $0x38] sm:$0xf] %v5285_v13  ;;  %1727 = vst [vmem:[#allocation2 + $0x3c] sm:$0x1] %v5285_v13  ;;  %v5687_v22 = vld [vmem:[#allocation2] sm:$0xf] }
  0x56   : > { %v1540_v15 = vrot.slane %v1538_v16, 4  ;;  %v1554_v29 = vrot.slane %v1552_v18, 4  ;;  %v1557_v30 = vrot.slane %v1555_v19, 5  ;;  %v1563_v16 = vrot.slane %v1561_v44, 5  ;;  %1728 = vst [vmem:[#allocation2 + $0x40] sm:$0xf] %v5285_v13 }
  0x57   : > { %v1578_v7 = vsel %vm5371_vm3, %v1573_v5, %v1577_v6  ;;  %1729 = vst [vmem:[#allocation2 + $0x44] sm:$0x1] %v5285_v13  ;;  %1730 = vst [vmem:[#allocation2 + $0x48] sm:$0xf] %v5285_v13  ;;  %v5195_v18 = vld [vmem:[%s6203_s3 + $0xa0] sm:$0xff]   ;;  %v5196_v19 = vld [vmem:[%s6203_s3 + $0x58] sm:$0xff]  }
  0x58   : > { %v1544_v27 = vor.u32 %v1543_v17, %v1540_v15  ;;  %v1558_v1 = vor.u32 %v1557_v30, %v1554_v29  ;;  %1731 = vst [vmem:[#allocation2 + $0x4c] sm:$0x1] %v5285_v13  ;;  %v5193_v15 = vld [vmem:[%s6203_s3 + $0x98] sm:$0xff]   ;;  %v5194_v17 = vld [vmem:[%s6203_s3 + $0x50] sm:$0xff]   ;;  %v1920_v28 = vshrl.u32 %v5687_v22, 16  ;;  %v1923_v34 = vshll.u32 %v5687_v22, 16 }
  0x59   : > { %v5694_v44 = vld [vmem:[%s6202_s2] ss:$0 sm:$0xff]  ;;  %v5702_v46 = vld [vmem:[#allocation2] sm:$0xe] }
  0x5a   : > { %v1545_v55 = vrot.slane %v1544_v27, 4  ;;  %v1559_v4 = vrot.slane %v1558_v1, 4  ;;  %v1922_v27 = vrot.slane %v1920_v28, 4  ;;  %v1925_v29 = vrot.slane %v1923_v34, 5  ;;  %v1854_v1 = vld [vmem:[#allocation2 + $0x1c] sm:$0x1] }
  0x5b   : > { %4740 = vmatmul.mubr.msk.bf16.gmra.mrb[4].mxu0 %vm307_vm0, %v5176_v62  ;;  %v1522_v62 = vsel %vm5371_vm3, %v1517_v58, %v5553_v26  ;;  %v5199_v26 = vld [vmem:[%s6203_s3 + $0xb0] sm:$0xff]   ;;  %v5675_v58 = vld [vmem:[%s6203_s3 + $0xc0] sm:$0xff]  }
  0x5c   : > { %4745 = vmatprep.mubr.msk.bf16.mxu0 %vm307_vm0, %v4164_v12  ;;  %v1550_v53 = vsel %vm5371_vm3, %v1545_v55, %v1549_v25  ;;  %v4230_v63 = vcombine.low %v1508_v61, %v1522_v62  ;;  %v1564_v0 = vsel %vm5371_vm3, %v1559_v4, %v1563_v16  ;;  %v5191_v12 = vld [vmem:[%s6203_s3 + $0x90] sm:$0xff]   ;;  %v5684_v25 = vld [vmem:[%s6203_s3] sm:$0xff]   ;;  %v1851_v62 = vld [vmem:[#allocation2 + $0x18] sm:$0xf] }
  0x5d   : > { %v4231_v3 = vcombine.low %v1536_v48, %v1550_v53  ;;  %v4232_v8 = vcombine.low %v1564_v0, %v1578_v7  ;;  %4835 = vmatprep.subr.bf16.mxu1 %v5191_v12  ;;  %v1836_v4 = vld [vmem:[#allocation2 + $0x8] sm:$0xf] }
  0x5e   : > { %4836 = vmatpush3.bf16.msra.mxu1 %v5191_v12 }
  0x5f   : > { %4837 = vmatprep.subr.bf16.mxu1 %v5193_v15 }
  0x62   : > { %4838 = vmatpush3.bf16.msra.mxu1 %v5193_v15 }
  0x63   : > { %4746 = vmatmul.mubr.msk.bf16.vlgmr.msra.gmra.mrb[0].mxu0 %vm307_vm0, %v4165_v39  ;;  %4839 = vmatprep.subr.bf16.mxu1 %v5195_v18 }
  0x64   : > { %4754 = vmatpush3.bf16.msra.mxu0 %v5501_v33  ;;  %4749 = vmatprep.mubr.msk.bf16.mxu0 %vm307_vm0, %v4166_v59  ;;  %v5180_v33 = vld [vmem:[%s5340_s7 + $0x18] ss:$8 sps:$4 sm:$0xff]  }
  0x65   : > { %4763 = vmatprep.subr.bf16.mxu0 %v5179_v54 }
  0x66   : > { %4840 = vmatpush3.bf16.msra.mxu1 %v5195_v18 }
  0x67   : > { %4841 = vmatprep.subr.bf16.mxu1 %v5197_v23 }
  0x6a   : > { %4842 = vmatpush3.bf16.msra.mxu1 %v5197_v23  ;;  %v1857_v23 = vld [vmem:[#allocation2 + $0x20] sm:$0xf] }
  0x6b   : > { %4750 = vmatmul.mubr.msk.bf16.gmra.mrb[4].mxu0 %vm307_vm0, %v4167_v47  ;;  %4843 = vmatprep.subr.bf16.mxu1 %v5199_v26 }
  0x6c   : > { %4755 = vmatprep.mubr.msk.bf16.mxu0 %vm307_vm0, %v5178_v40  ;;  %v1926_v40 = vor.u32 %v1925_v29, %v1922_v27 }
  0x6e   : > { %4844 = vmatpush3.bf16.msra.mxu1 %v5199_v26 }
  0x6f   : > { %4845 = vmatprep.subr.bf16.mxu1 %v5201_v20 }
  0x72   : > { %4846 = vmatpush3.bf16.msra.mxu1 %v5201_v20 }
  0x73   : > { %4756 = vmatmul.mubr.msk.bf16.vlgmr.msra.gmra.mrb[0].mxu0 %vm307_vm0, %v5180_v33  ;;  %4855 = vmatprep.subr.bf16.mxu1 %v5675_v58 }
  0x74   : > { %4764 = vmatpush3.bf16.msra.mxu0 %v5179_v54  ;;  %4759 = vmatprep.mubr.msk.bf16.mxu0 %vm307_vm0, %v5181_v49  ;;  %v5698_v54 = vld [vmem:[#allocation2 + $0x4] sm:$0x1] }
  0x75   : > { %4773 = vmatprep.subr.bf16.mxu0 %v5184_v21  ;;  %v1929_v41 = vshll.u32 %v5698_v54, 16 }
  0x77   : > { %v5707_v56 = vrot.slane %v1929_v41, 5 }
  0x7b   : > { %4760 = vmatmul.mubr.msk.bf16.gmra.mrb[4].mxu0 %vm307_vm0, %v5182_v36 }
  0x7c   : > { %4765 = vmatprep.mubr.msk.bf16.mxu0 %vm307_vm0, %v5183_v42 }
  0x83   : > { %4766 = vmatmul.mubr.msk.bf16.vlgmr.msra.gmra.mrb[0].mxu0 %vm307_vm0, %v5185_v43  ;;  %v4287_v43 = vrot.slane %v5702_v46, 9 }
  0x84   : > { %4774 = vmatpush3.bf16.msra.mxu0 %v5184_v21  ;;  %4769 = vmatprep.mubr.msk.bf16.mxu0 %vm307_vm0, %v5186_v50  ;;  %v2343_v50 = vrot.slane %v5698_v54, 5 }
  0x85   : > { %4783 = vmatprep.subr.bf16.mxu0 %v5190_v2 }
  0x8b   : > { %4770 = vmatmul.mubr.msk.bf16.gmra.mrb[4].mxu0 %vm307_vm0, %v5187_v51 }
  0x8c   : > { %4775 = vmatprep.mubr.msk.bf16.mxu0 %vm307_vm0, %v4229_v60  ;;  %v5709_v60 = vrot.slane %v1926_v40, 4 }
  0x93   : > { %4776 = vmatmul.mubr.msk.bf16.vlgmr.msra.gmra.mrb[0].mxu0 %vm307_vm0, %v4230_v63 }
  0x94   : > { %4779 = vmatprep.mubr.msk.bf16.mxu0 %vm307_vm0, %v4231_v3  ;;  %4784 = vmatpush3.bf16.msra.mxu0 %v5190_v2  ;;  %v1842_v2 = vld [vmem:[#allocation2 + $0xc] sm:$0x1] }
  0x95   : > { %4785 = vmatprep.subr.bf16.mxu0 %v5192_v14 }
  0x98   : > { %4786 = vmatpush3.bf16.msra.mxu0 %v5192_v14 }
  0x99   : > { %4787 = vmatprep.subr.bf16.mxu0 %v5194_v17 }
  0x9b   : > { %4780 = vmatmul.mubr.msk.bf16.gmra.mrb[4].mxu0 %vm307_vm0, %v4232_v8 }
  0x9c   : > { %4788 = vmatpush3.bf16.msra.mxu0 %v5194_v17 }
  0x9d   : > { %4789 = vmatprep.subr.bf16.mxu0 %v5196_v19 }
  0xa0   : > { %4790 = vmatpush3.bf16.msra.mxu0 %v5196_v19 }
  0xa1   : > { %4791 = vmatprep.subr.bf16.mxu0 %v5198_v11 }
  0xa4   : > { %4792 = vmatpush3.bf16.msra.mxu0 %v5198_v11 }
  0xa5   : > { %4793 = vmatprep.subr.bf16.mxu0 %v5200_v10 }
  0xa8   : > { %4794 = vmatpush3.bf16.msra.mxu0 %v5200_v10 }
  0xa9   : > { %4795 = vmatprep.subr.bf16.mxu0 %v5202_v57 }
  0xac   : > { %4796 = vmatpush3.bf16.msra.mxu0 %v5202_v57  ;;  %v1860_v57 = vld [vmem:[#allocation2 + $0x24] sm:$0x1] }
  0xad   : > { %4797 = vmatprep.subr.bf16.mxu0 %v5204_v24 }
  0xb0   : > { %4798 = vmatpush3.bf16.msra.mxu0 %v5204_v24 }
  0xb1   : > { %4807 = vmatprep.subr.bf16.mxu0 %v5684_v25 }
 0x166   : > { %v4777_v30 = vpop.f32.mrb[0].mxu0 }
 0x167   : > { %v1694_v31 = vadd.f32 %v4777_v30, %v5694_v44  ;;  %v1646_v32 = vpop.f32.mrb[1].mxu0 }
 0x168   : > { %v1692_v37 = vadd.f32 %v5694_v44, %v1646_v32  ;;  %v4778_v39 = vpop.f32.mrb[2].mxu0  ;;  %v1848_v32 = vld [vmem:[#allocation2 + $0x14] sm:$0x1] }
 0x169   : > { %v1702_v59 = vmax.f32 %v1694_v31, 0.0  ;;  %v1695_v55 = vadd.f32 %v4778_v39, %v5694_v44  ;;  %v1649_v35 = vpop.f32.mrb[3].mxu0  ;;  %v1845_v31 = vld [vmem:[#allocation2 + $0x10] sm:$0xf] }
 0x16a   : > { %v1700_v47 = vmax.f32 %v1692_v37, 0.0  ;;  %v1693_v33 = vadd.f32 %v5694_v44, %v1649_v35 }
 0x16b   : > { %v4529_v49 = vpack.c.bf16 %v1702_v59, %v1702_v59  ;;  %v1703_v21 = vmax.f32 %v1695_v55, 0.0 }
 0x16c   : > { %v4527_v36 = vpack.c.bf16 %v1700_v47, %v1700_v47  ;;  %v1701_v42 = vmax.f32 %v1693_v33, 0.0 }
 0x16d   : > { %v1769_v51 = vshrl.u32 %v4529_v49, 16  ;;  %v4530_v52 = vpack.c.bf16 %v1703_v21, %v1703_v21  ;;  %v1772_v61 = vshll.u32 %v4529_v49, 16 }
 0x16e   : > { %v1753_v45 = vshrl.u32 %v4527_v36, 16  ;;  %v1756_v48 = vshll.u32 %v4527_v36, 16  ;;  %v4528_v53 = vpack.c.bf16 %v1701_v42, %v1701_v42  ;;  %v4781_v63 = vpop.f32.mrb[4].mxu0 }
 0x16f   : > { %v1771_v16 = vrot.slane %v1769_v51, 7  ;;  %v1777_v5 = vshrl.u32 %v4530_v52, 16  ;;  %v1780_v6 = vshll.u32 %v4530_v52, 16  ;;  %v1698_v0 = vadd.f32 %v4781_v63, %v5694_v44  ;;  %v1662_v7 = vpop.f32.mrb[5].mxu0 }
 0x170   : > { %v1755_v9 = vrot.slane %v1753_v45, 7  ;;  %v1761_v12 = vshrl.u32 %v4528_v53, 16  ;;  %v1764_v13 = vshll.u32 %v4528_v53, 16  ;;  %v1696_v14 = vadd.f32 %v5694_v44, %v1662_v7  ;;  %v4782_v15 = vpop.f32.mrb[6].mxu0 }
 0x171   : > { %v1774_v17 = vor.u32 %v1772_v61, %v1771_v16  ;;  %v1775_v18 = vrot.slane %v1771_v16, 4  ;;  %v1779_v19 = vrot.slane %v1777_v5, 7  ;;  %v1706_v11 = vmax.f32 %v1698_v0, 0.0  ;;  %v1665_v26 = vpop.f32.mrb[7].mxu0  ;;  %v1878_v16 = vld [vmem:[#allocation2 + $0x3c] sm:$0x1] }
 0x172   : > { %v1758_v10 = vor.u32 %v1756_v48, %v1755_v9  ;;  %v1759_v20 = vrot.slane %v1755_v9, 4  ;;  %v1763_v24 = vrot.slane %v1761_v12, 7  ;;  %v1704_v28 = vmax.f32 %v1696_v14, 0.0  ;;  %v1875_v48 = vld [vmem:[#allocation2 + $0x38] sm:$0xf] }
 0x173   : > { %v1852_v34 = vsel %vm5713_vm10, %v1774_v17, %v1851_v62  ;;  %v1855_v27 = vsel %vm5720_vm11, %v1775_v18, %v1854_v1  ;;  %v1782_v29 = vor.u32 %v1780_v6, %v1779_v19  ;;  %v1783_v30 = vrot.slane %v1779_v19, 4 }
 0x174   : > { %1853 = vst [vmem:[#allocation2 + $0x18] sm:$0xf] %v1852_v34  ;;  %1856 = vst [vmem:[#allocation2 + $0x1c] sm:$0x1] %v1855_v27  ;;  %v1837_v37 = vsel %vm5713_vm10, %v1758_v10, %v1836_v4  ;;  %v1843_v39 = vsel %vm5720_vm11, %v1759_v20, %v1842_v2  ;;  %v1766_v59 = vor.u32 %v1764_v13, %v1763_v24  ;;  %v1767_v55 = vrot.slane %v1763_v24, 4 }
 0x175   : > { %1838 = vst [vmem:[#allocation2 + $0x8] sm:$0xf] %v1837_v37  ;;  %1844 = vst [vmem:[#allocation2 + $0xc] sm:$0x1] %v1843_v39  ;;  %v1858_v35 = vsel %vm5713_vm10, %v1782_v29, %v1857_v23  ;;  %v1861_v41 = vsel %vm5720_vm11, %v1783_v30, %v1860_v57  ;;  %v4533_v40 = vpack.c.bf16 %v1706_v11, %v1706_v11  ;;  %v1863_v4 = vld [vmem:[#allocation2 + $0x28] sm:$0xf] }
 0x176   : > { %v4531_v47 = vpack.c.bf16 %v1704_v28, %v1704_v28  ;;  %1859 = vst [vmem:[#allocation2 + $0x20] sm:$0xf] %v1858_v35  ;;  %1862 = vst [vmem:[#allocation2 + $0x24] sm:$0x1] %v1861_v41  ;;  %v1846_v33 = vsel %vm5713_vm10, %v1766_v59, %v1845_v31  ;;  %v1849_v49 = vsel %vm5720_vm11, %v1767_v55, %v1848_v32  ;;  %v1881_v11 = vld [vmem:[#allocation2 + $0x40] sm:$0xf] }
 0x177   : > { %v1699_v21 = vadd.f32 %v4782_v15, %v5694_v44  ;;  %v1697_v36 = vadd.f32 %v5694_v44, %v1665_v26  ;;  %1847 = vst [vmem:[#allocation2 + $0x10] sm:$0xf] %v1846_v33  ;;  %1850 = vst [vmem:[#allocation2 + $0x14] sm:$0x1] %v1849_v49  ;;  %v1801_v42 = vshrl.u32 %v4533_v40, 16  ;;  %v1804_v45 = vshll.u32 %v4533_v40, 16 }
 0x178   : > { %v1785_v51 = vshrl.u32 %v4531_v47, 16  ;;  %v1788_v63 = vshll.u32 %v4531_v47, 16  ;;  %v1866_v44 = vld [vmem:[#allocation2 + $0x2c] sm:$0x1]  ;;  %v5755_v0 = vsel %vm5745_vm12, %v4287_v43, %v2343_v50  ;;  %v1932_v7 = vsel %vm5371_vm3, %v5709_v60, %v5707_v56  ;;  %v1884_v26 = vld [vmem:[#allocation2 + $0x44] sm:$0x1] }
 0x179   : > { %v1707_v61 = vmax.f32 %v1699_v21, 0.0  ;;  %v1705_v62 = vmax.f32 %v1697_v36, 0.0  ;;  %v1803_v1 = vrot.slane %v1801_v42, 7  ;;  %v1869_v10 = vld [vmem:[#allocation2 + $0x30] sm:$0xf] }
 0x17a   : > { %v1787_v53 = vrot.slane %v1785_v51, 7  ;;  %v1872_v20 = vld [vmem:[#allocation2 + $0x34] sm:$0x1] }
 0x17b   : > { %v4534_v5 = vpack.c.bf16 %v1707_v61, %v1707_v61  ;;  %v4532_v6 = vpack.c.bf16 %v1705_v62, %v1705_v62  ;;  %v1806_v9 = vor.u32 %v1804_v45, %v1803_v1  ;;  %v1807_v2 = vrot.slane %v1803_v1, 4  ;;  %v5761_v14 = vld [vmem:[#allocation2 + $0x1c] sm:$0x1]  ;;  %v2317_v37 = vld [vmem:[#allocation2 + $0x18] sm:$0xe] }
 0x17c   : > { %v1790_v12 = vor.u32 %v1788_v63, %v1787_v53  ;;  %v1791_v13 = vrot.slane %v1787_v53, 4  ;;  %v1912_v46 = vld [vmem:[#allocation2 + $0xc] sm:$0x1]  ;;  %v2315_v57 = vld [vmem:[#allocation2 + $0x8] sm:$0xe]  ;;  %v1971_v32 = vshll.u32 %v5761_v14, 16 }
 0x17d   : > { %v1809_v15 = vshrl.u32 %v4534_v5, 16  ;;  %v1812_v17 = vshll.u32 %v4534_v5, 16  ;;  %v1793_v54 = vshrl.u32 %v4532_v6, 16  ;;  %v1796_v18 = vshll.u32 %v4532_v6, 16  ;;  %v5772_v47 = vld [vmem:[#allocation2 + $0x8] sm:$0xf] }
 0x17e   : > { %v1876_v43 = vsel %vm5713_vm10, %v1806_v9, %v1875_v48  ;;  %v1879_v50 = vsel %vm5720_vm11, %v1807_v2, %v1878_v16  ;;  %v1864_v19 = vsel %vm5713_vm10, %v1790_v12, %v1863_v4  ;;  %v1867_v23 = vsel %vm5720_vm11, %v1791_v13, %v1866_v44  ;;  %v1913_v29 = vld [vmem:[#allocation2 + $0x14] sm:$0x1]  ;;  %v2316_v40 = vld [vmem:[#allocation2 + $0x10] sm:$0xe]  ;;  %v5792_v45 = vld [vmem:[#allocation2 + $0x18] sm:$0xf] }
 0x17f   : > { %1877 = vst [vmem:[#allocation2 + $0x38] sm:$0xf] %v1876_v43  ;;  %1880 = vst [vmem:[#allocation2 + $0x3c] sm:$0x1] %v1879_v50  ;;  %v1811_v24 = vrot.slane %v1809_v15, 7  ;;  %v1795_v28 = vrot.slane %v1793_v54, 7 }
 0x180   : > { %1865 = vst [vmem:[#allocation2 + $0x28] sm:$0xf] %v1864_v19  ;;  %1868 = vst [vmem:[#allocation2 + $0x2c] sm:$0x1] %v1867_v23  ;;  %v1943_v34 = vshll.u32 %v1912_v46, 16  ;;  %v4288_v27 = vrot.slane %v2315_v57, 9 }
 0x181   : > { %v2347_v30 = vrot.slane %v1912_v46, 5  ;;  %v1957_v31 = vshll.u32 %v1913_v29, 16  ;;  %v2351_v39 = vrot.slane %v1913_v29, 5  ;;  %v1814_v59 = vor.u32 %v1812_v17, %v1811_v24  ;;  %v5782_v42 = vld [vmem:[#allocation2 + $0x10] sm:$0xf]  ;;  %v5205_v54 = vld [vmem:[%s6203_s3 + $0xc8] sm:$0xff]  }
 0x182   : > { %v1815_v55 = vrot.slane %v1811_v24, 4  ;;  %v1798_v35 = vor.u32 %v1796_v18, %v1795_v28  ;;  %v1799_v41 = vrot.slane %v1795_v28, 4  ;;  %v5774_v33 = vrot.slane %v1943_v34, 5  ;;  %v5796_v4 = vld [vmem:[#allocation2 + $0x24] sm:$0x1]  ;;  %v5207_v29 = vld [vmem:[%s6203_s3 + $0xd0] sm:$0xff]  }
 0x183   : > { %v2348_v49 = vsel %vm5745_vm12, %v4288_v27, %v2347_v30  ;;  %v5778_v21 = vrot.slane %v1957_v31, 5  ;;  %v5780_v36 = vrot.slane %v1971_v32, 5  ;;  %v1882_v51 = vsel %vm5713_vm10, %v1814_v59, %v1881_v11  ;;  %v2318_v44 = vld [vmem:[#allocation2 + $0x20] sm:$0xe] }
 0x184   : > { %v1885_v61 = vsel %vm5720_vm11, %v1815_v55, %v1884_v26  ;;  %v1870_v62 = vsel %vm5713_vm10, %v1798_v35, %v1869_v10  ;;  %v1873_v1 = vsel %vm5720_vm11, %v1799_v41, %v1872_v20  ;;  %1883 = vst [vmem:[#allocation2 + $0x40] sm:$0xf] %v1882_v51  ;;  %v4311_v48 = vcombine.low %v5755_v0, %v2348_v49  ;;  %v5810_v15 = vld [vmem:[#allocation2 + $0x20] sm:$0xf] }
 0x185   : > { %1886 = vst [vmem:[#allocation2 + $0x44] sm:$0x1] %v1885_v61  ;;  %1871 = vst [vmem:[#allocation2 + $0x30] sm:$0xf] %v1870_v62  ;;  %v4289_v53 = vrot.slane %v2316_v40, 9  ;;  %v4290_v63 = vrot.slane %v2317_v37, 9 }
 0x186   : > { %1874 = vst [vmem:[#allocation2 + $0x34] sm:$0x1] %v1873_v1  ;;  %v2355_v16 = vrot.slane %v5761_v14, 5  ;;  %v1934_v3 = vshrl.u32 %v5772_v47, 16  ;;  %v1937_v8 = vshll.u32 %v5772_v47, 16  ;;  %v1948_v5 = vshrl.u32 %v5782_v42, 16  ;;  %4847 = vmatprep.mubr.bf16.mxu1 %v4311_v48 }
 0x187   : > { %v1951_v6 = vshll.u32 %v5782_v42, 16  ;;  %v2352_v9 = vsel %vm5745_vm12, %v4289_v53, %v2351_v39  ;;  %v1962_v2 = vshrl.u32 %v5792_v45, 16  ;;  %v1965_v12 = vshll.u32 %v5792_v45, 16  ;;  %v5808_v13 = vld [vmem:[#allocation2 + $0x2c] sm:$0x1] }
 0x188   : > { %v2356_v0 = vsel %vm5745_vm12, %v4290_v63, %v2355_v16  ;;  %v2319_v14 = vld [vmem:[#allocation2 + $0x28] sm:$0xe]  ;;  %v1936_v18 = vrot.slane %v1934_v3, 4  ;;  %v1939_v46 = vrot.slane %v1937_v8, 5  ;;  %v1950_v43 = vrot.slane %v1948_v5, 4  ;;  %v5210_v3 = vld [vmem:[%s6203_s3 + $0xd8] sm:$0xff]  }
 0x189   : > { %v4312_v17 = vcombine.low %v2352_v9, %v2356_v0  ;;  %v5815_v50 = vld [vmem:[#allocation2 + $0x3c] sm:$0x1]  ;;  %v1953_v19 = vrot.slane %v1951_v6, 5  ;;  %v1964_v23 = vrot.slane %v1962_v2, 4  ;;  %v1967_v11 = vrot.slane %v1965_v12, 5 }
 0x18a   : > { %v4291_v26 = vrot.slane %v2318_v44, 9  ;;  %v2321_v10 = vld [vmem:[#allocation2 + $0x38] sm:$0xe]  ;;  %v1940_v20 = vor.u32 %v1939_v46, %v1936_v18  ;;  %v2359_v57 = vrot.slane %v5796_v4, 5  ;;  %v4292_v24 = vrot.slane %v2319_v14, 9 }
 0x18b   : > { %4848 = vmatmul.mubr.bf16.vlgmr.msra.gmra.mrb[0].mxu1 %v4312_v17  ;;  %v2363_v28 = vrot.slane %v5808_v13, 5  ;;  %v1954_v34 = vor.u32 %v1953_v19, %v1950_v43  ;;  %v1968_v27 = vor.u32 %v1967_v11, %v1964_v23  ;;  %v4294_v30 = vrot.slane %v2321_v10, 9  ;;  %v5831_v51 = vld [vmem:[#allocation2 + $0x28] sm:$0xf]  ;;  %v5863_v6 = vld [vmem:[#allocation2 + $0x38] sm:$0xf] }
 0x18c   : > { %4856 = vmatpush3.bf16.msra.mxu1 %v5675_v58  ;;  %v2371_v31 = vrot.slane %v5815_v50, 5  ;;  %v1941_v32 = vrot.slane %v1940_v20, 4  ;;  %v2360_v37 = vsel %vm5745_vm12, %v4291_v26, %v2359_v57  ;;  %v2320_v58 = vld [vmem:[#allocation2 + $0x30] sm:$0xe]  ;;  %v1976_v55 = vshrl.u32 %v5810_v15, 16 }
 0x18d   : > { %4857 = vmatprep.subr.bf16.mxu1 %v5205_v54  ;;  %v2364_v39 = vsel %vm5745_vm12, %v4292_v24, %v2363_v28  ;;  %v5828_v59 = vld [vmem:[#allocation2 + $0x34] sm:$0x1]  ;;  %v1955_v35 = vrot.slane %v1954_v34, 4  ;;  %v1969_v41 = vrot.slane %v1968_v27, 4  ;;  %v4293_v49 = vrot.slane %v2320_v58, 9 }
 0x18e   : > { %v4313_v40 = vcombine.low %v2360_v37, %v2364_v39  ;;  %v1946_v61 = vsel %vm5371_vm3, %v1941_v32, %v5774_v33  ;;  %v2367_v62 = vrot.slane %v5828_v59, 5  ;;  %v1978_v1 = vrot.slane %v1976_v55, 4  ;;  %v5849_v16 = vld [vmem:[#allocation2 + $0x30] sm:$0xf]  ;;  %v5215_v39 = vld [vmem:[%s6203_s3 + $0xe8] sm:$0xff]  }
 0x18f   : > { %v4263_v48 = vcombine.low %v1932_v7, %v1946_v61  ;;  %v1960_v53 = vsel %vm5371_vm3, %v1955_v35, %v5778_v21  ;;  %v1974_v63 = vsel %vm5371_vm3, %v1969_v41, %v5780_v36  ;;  %v1979_v33 = vshll.u32 %v5810_v15, 16  ;;  %v5208_v7 = vld [vmem:[%s6203_s3 + $0x8] sm:$0xff]   ;;  %v2699_v61 = vld [vmem:[#allocation2 + $0x10] sm:$0xf] }
 0x190   : > { %4858 = vmatpush3.bf16.msra.mxu1 %v5205_v54  ;;  %4851 = vmatprep.mubr.bf16.mxu1 %v4313_v40  ;;  %v4264_v44 = vcombine.low %v1960_v53, %v1974_v63  ;;  %v2368_v56 = vsel %vm5745_vm12, %v4293_v49, %v2367_v62  ;;  %v2372_v60 = vsel %vm5745_vm12, %v4294_v30, %v2371_v31  ;;  %v1990_v21 = vshrl.u32 %v5831_v51, 16  ;;  %v5209_v14 = vld [vmem:[#allocation2 + $0x8] ss:$8 sps:$4 sm:$0xff]   ;;  %v5216_v49 = vld [vmem:[%s6203_s3 + $0x20] sm:$0xff]  }
 0x191   : > { %4859 = vmatprep.subr.bf16.mxu1 %v5207_v29  ;;  %4799 = vmatprep.mubr.bf16.mxu0 %v4263_v48  ;;  %v4314_v36 = vcombine.low %v2368_v56, %v2372_v60  ;;  %v1981_v8 = vrot.slane %v1979_v33, 5  ;;  %v1993_v5 = vshll.u32 %v5831_v51, 16  ;;  %v1985_v9 = vshll.u32 %v5796_v4, 16  ;;  %v5211_v4 = vld [vmem:[%s6203_s3 + $0x10] sm:$0xff]   ;;  %v2697_v48 = vld [vmem:[#allocation2 + $0x8] sm:$0xf] }
 0x192   : > { %4800 = vmatmul.mubr.bf16.vlgmr.msra.gmra.mrb[8].mxu0 %v4264_v44  ;;  %v1992_v0 = vrot.slane %v1990_v21, 4  ;;  %v2004_v2 = vshrl.u32 %v5849_v16, 16  ;;  %v2007_v12 = vshll.u32 %v5849_v16, 16  ;;  %v1999_v18 = vshll.u32 %v5808_v13, 16  ;;  %v5213_v13 = vld [vmem:[%s6203_s3 + $0xe0] sm:$0xff]   ;;  %v5218_v33 = vld [vmem:[%s6203_s3 + $0x28] sm:$0xff]  }
 0x193   : > { %4808 = vmatpush3.bf16.msra.mxu0 %v5684_v25  ;;  %4852 = vmatmul.mubr.bf16.gmra.mrb[4].mxu1 %v4314_v36  ;;  %v1982_v17 = vor.u32 %v1981_v8, %v1978_v1  ;;  %v1995_v54 = vrot.slane %v1993_v5, 5  ;;  %v2013_v46 = vshll.u32 %v5828_v59, 16  ;;  %v2018_v23 = vshrl.u32 %v5863_v6, 16  ;;  %v5217_v1 = vld [vmem:[%s6203_s3 + $0xf0] sm:$0xff]   ;;  %v5222_v21 = vld [vmem:[%s6203_s3 + $0x100] sm:$0xff]  }
 0x194   : > { %4860 = vmatpush3.bf16.msra.mxu1 %v5207_v29  ;;  %4809 = vmatprep.subr.bf16.mxu0 %v5208_v7  ;;  %v2006_v43 = vrot.slane %v2004_v2, 4  ;;  %v2009_v19 = vrot.slane %v2007_v12, 5  ;;  %v2021_v25 = vshll.u32 %v5863_v6, 16  ;;  %v2027_v24 = vshll.u32 %v5815_v50, 16  ;;  %v5214_v50 = vld [vmem:[%s6203_s3 + $0x18] sm:$0xff]   ;;  %v5225_v12 = vld [vmem:[%s6203_s3 + $0x108] sm:$0xff]  }
 0x195   : > { %4871 = vmatprep.mubr.bf16.mxu1 %v5209_v14  ;;  %4861 = vmatprep.subr.bf16.mxu1 %v5210_v3  ;;  %v1983_v11 = vrot.slane %v1982_v17, 4  ;;  %v1996_v26 = vor.u32 %v1995_v54, %v1992_v0  ;;  %v2020_v20 = vrot.slane %v2018_v23, 4  ;;  %v1987_v28 = vrot.slane %v1985_v9, 5  ;;  %v5914_v8 = vld [vmem:[#allocation2 + $0x14] sm:$0x1]  ;;  %v5224_v9 = vld [vmem:[%s6203_s3 + $0x38] sm:$0xff]  }
 0x196   : > { %v2010_v10 = vor.u32 %v2009_v19, %v2006_v43  ;;  %v2023_v57 = vrot.slane %v2021_v25, 5  ;;  %v2001_v27 = vrot.slane %v1999_v18, 5  ;;  %v2015_v30 = vrot.slane %v2013_v46, 5  ;;  %v5919_v0 = vld [vmem:[#allocation2 + $0xc] sm:$0x1] }
 0x197   : > { %4810 = vmatpush3.bf16.msra.mxu0 %v5208_v7  ;;  %v1997_v34 = vrot.slane %v1996_v26, 4  ;;  %v1988_v32 = vsel %vm5371_vm3, %v1983_v11, %v1987_v28  ;;  %v2029_v35 = vrot.slane %v2027_v24, 5  ;;  %v4275_v62 = vcombine.low %v5687_v22, %v5772_v47  ;;  %v5219_v22 = vld [vmem:[%s6203_s3 + $0xf8] sm:$0xff]   ;;  %v5220_v7 = vld [vmem:[%s6203_s3 + $0x30] sm:$0xff]   ;;  %v2703_v24 = vld [vmem:[#allocation2 + $0x20] sm:$0xf] }
 0x198   : > { %4862 = vmatpush3.bf16.msra.mxu1 %v5210_v3  ;;  %4811 = vmatprep.subr.bf16.mxu0 %v5211_v4  ;;  %v2011_v29 = vrot.slane %v2010_v10, 4  ;;  %v2024_v31 = vor.u32 %v2023_v57, %v2020_v20  ;;  %v2728_v53 = vshrl.u32 %v2699_v61, 16  ;;  %v2731_v63 = vshll.u32 %v2699_v61, 16  ;;  %v5221_v2 = vld [vmem:[#allocation2 + $0x18] ss:$8 sps:$4 sm:$0xff]  }
 0x199   : > { %v2002_v37 = vsel %vm5371_vm3, %v1997_v34, %v2001_v27  ;;  %4863 = vmatprep.subr.bf16.mxu1 %v5213_v13  ;;  %v2714_v47 = vshrl.u32 %v2697_v48, 16  ;;  %v2717_v44 = vshll.u32 %v2697_v48, 16  ;;  %v2737_v17 = vshll.u32 %v5914_v8, 16  ;;  %v5223_v54 = vld [vmem:[#allocation2 + $0x28] ss:$8 sps:$4 sm:$0xff]   ;;  %v5230_v20 = vld [vmem:[%s6203_s3 + $0x118] sm:$0xff]  }
 0x19a   : > { %v4265_v59 = vcombine.low %v1988_v32, %v2002_v37  ;;  %v2016_v58 = vsel %vm5371_vm3, %v2011_v29, %v2015_v30  ;;  %v2025_v55 = vrot.slane %v2024_v31, 4  ;;  %v2730_v56 = vrot.slane %v2728_v53, 4  ;;  %v2705_v34 = vld [vmem:[#allocation2 + $0x28] sm:$0xf]  ;;  %v5954_v61 = vld [vmem:[#allocation2 + $0x24] sm:$0x1] }
 0x19b   : > { %4812 = vmatpush3.bf16.msra.mxu0 %v5211_v4  ;;  %v2733_v60 = vrot.slane %v2731_v63, 5  ;;  %v2716_v36 = vrot.slane %v2714_v47, 4  ;;  %v2719_v3 = vrot.slane %v2717_v44, 5  ;;  %v2723_v18 = vshll.u32 %v5919_v0, 16  ;;  %v5229_v4 = vld [vmem:[%s6203_s3 + $0x110] sm:$0xff]   ;;  %v5233_v37 = vld [vmem:[%s6203_s3 + $0x128] sm:$0xff]  }
 0x19c   : > { %4803 = vmatprep.mubr.bf16.mxu0 %v4265_v59  ;;  %v2030_v41 = vsel %vm5371_vm3, %v2025_v55, %v2029_v35  ;;  %4864 = vmatpush3.bf16.msra.mxu1 %v5213_v13  ;;  %v2739_v19 = vrot.slane %v2737_v17, 5  ;;  %v4276_v11 = vcombine.low %v5782_v42, %v5792_v45  ;;  %v4277_v26 = vcombine.low %v5810_v15, %v5831_v51  ;;  %v5228_v13 = vld [vmem:[#allocation2 + $0x38] ss:$8 sps:$4 sm:$0xff]   ;;  %v2707_v42 = vld [vmem:[#allocation2 + $0x30] sm:$0xf] }
 0x19d   : > { %v4266_v40 = vcombine.low %v2016_v58, %v2030_v41  ;;  %4813 = vmatprep.subr.bf16.mxu0 %v5214_v50  ;;  %4865 = vmatprep.subr.bf16.mxu1 %v5215_v39  ;;  %v2734_v5 = vor.u32 %v2733_v60, %v2730_v56  ;;  %v2720_v14 = vor.u32 %v2719_v3, %v2716_v36  ;;  %v2725_v23 = vrot.slane %v2723_v18, 5  ;;  %v5232_v45 = vld [vmem:[%s6203_s3 + $0x120] sm:$0xff]   ;;  %v2701_v15 = vld [vmem:[#allocation2 + $0x18] sm:$0xf]  ;;  %v5956_v63 = vld [vmem:[#allocation2 + $0x34] sm:$0x1] }
 0x19e   : > { %v2756_v51 = vshrl.u32 %v2703_v24, 16  ;;  %v2759_v28 = vshll.u32 %v2703_v24, 16  ;;  %v2784_v27 = vshrl.u32 %v2707_v42, 16  ;;  %v2787_v29 = vshll.u32 %v2707_v42, 16  ;;  %v2711_v41 = vld [vmem:[#allocation2 + $0x40] sm:$0xf] }
 0x19f   : > { %4804 = vmatmul.mubr.bf16.gmra.mrb[12].mxu0 %v4266_v40  ;;  %v2735_v46 = vrot.slane %v2734_v5, 4  ;;  %v2721_v43 = vrot.slane %v2720_v14, 4  ;;  %v4278_v30 = vcombine.low %v5849_v16, %v5863_v6  ;;  %v2742_v31 = vshrl.u32 %v2701_v15, 16  ;;  %v5234_v16 = vld [vmem:[%s6203_s3 + $0x130] sm:$0xff]   ;;  %v2709_v48 = vld [vmem:[#allocation2 + $0x38] sm:$0xf] }
 0x1a0   : > { %4823 = vmatprep.mubr.bf16.mxu0 %v4275_v62  ;;  %4814 = vmatpush3.bf16.msra.mxu0 %v5214_v50  ;;  %v2745_v32 = vshll.u32 %v2701_v15, 16  ;;  %v2770_v50 = vshrl.u32 %v2705_v34, 16  ;;  %v2758_v59 = vrot.slane %v2756_v51, 4  ;;  %v2761_v58 = vrot.slane %v2759_v28, 5  ;;  %v5958_v47 = vld [vmem:[#allocation2 + $0x1c] sm:$0x1] }
 0x1a1   : > { %4866 = vmatpush3.bf16.msra.mxu1 %v5215_v39  ;;  %4815 = vmatprep.subr.bf16.mxu0 %v5216_v49  ;;  %v2740_v25 = vsel %vm5371_vm3, %v2735_v46, %v2739_v19  ;;  %v2726_v10 = vsel %vm5371_vm3, %v2721_v43, %v2725_v23  ;;  %v2773_v39 = vshll.u32 %v2705_v34, 16  ;;  %v2786_v55 = vrot.slane %v2784_v27, 4  ;;  %v5235_v3 = vld [vmem:[%s6203_s3 + $0x138] sm:$0xff]   ;;  %v5236_v23 = vld [vmem:[%s6203_s3 + $0x140] sm:$0xff]   ;;  %v5274_v27 = vld [vmem:[%s5340_s7 + $0xe8] ss:$8 sps:$4 sm:$0xff]  }
 0x1a2   : > { %4867 = vmatprep.subr.bf16.mxu1 %v5217_v1  ;;  %v4367_v57 = vcombine.low %v2726_v10, %v2740_v25  ;;  %v2789_v35 = vrot.slane %v2787_v29, 5  ;;  %v2744_v6 = vrot.slane %v2742_v31, 4  ;;  %v2747_v40 = vrot.slane %v2745_v32, 5  ;;  %v5978_v42 = vld [vmem:[#allocation2 + $0x3c] sm:$0x1]  ;;  %v5237_v31 = vld [vmem:[%s6203_s3 + $0x148] sm:$0xff]  }
 0x1a3   : > { %v2772_v62 = vrot.slane %v2770_v50, 4  ;;  %v2762_v53 = vor.u32 %v2761_v58, %v2758_v59  ;;  %v2765_v60 = vshll.u32 %v5954_v61, 16  ;;  %v2801_v36 = vshll.u32 %v2709_v48, 16  ;;  %v5273_v34 = vld [vmem:[%s5340_s7 + $0xd8] ss:$8 sps:$4 sm:$0xff]  }
 0x1a4   : > { %4816 = vmatpush3.bf16.msra.mxu0 %v5216_v49  ;;  %v5269_v49 = vld [vmem:[%s6204_s4] sm:$0xff]   ;;  %v2790_v44 = vor.u32 %v2789_v35, %v2786_v55  ;;  %v2748_v56 = vor.u32 %v2747_v40, %v2744_v6  ;;  %v3009_v58 = vrot.slane %v5914_v8, 5  ;;  %v3005_v40 = vrot.slane %v5919_v0, 5  ;;  %v5239_v0 = vld [vmem:[%s6203_s3 + $0x158] sm:$0xff]  }
 0x1a5   : > { %4868 = vmatpush3.bf16.msra.mxu1 %v5217_v1  ;;  %4817 = vmatprep.subr.bf16.mxu0 %v5218_v33  ;;  %v2775_v1 = vrot.slane %v2773_v39, 5  ;;  %v2803_v19 = vrot.slane %v2801_v36, 5  ;;  %v2979_v39 = vld [vmem:[#allocation2 + $0x8] sm:$0xe]  ;;  %v2984_v36 = vld [vmem:[#allocation2 + $0x30] sm:$0xe] }
 0x1a6   : > { %4869 = vmatprep.subr.bf16.mxu1 %v5219_v22  ;;  %v2791_v18 = vrot.slane %v2790_v44, 4  ;;  %v2749_v46 = vrot.slane %v2748_v56, 4  ;;  %v4379_v6 = vrot.slane %v2979_v39, 9  ;;  %v5240_v44 = vld [vmem:[%s6203_s3 + $0x160] sm:$0xff]   ;;  %v5241_v56 = vld [vmem:[%s6203_s3 + $0x168] sm:$0xff]  }
 0x1a7   : > { %v2776_v5 = vor.u32 %v2775_v1, %v2772_v62  ;;  %v5276_v1 = vld [vmem:[%s5340_s7 + $0x108] ss:$8 sps:$4 sm:$0xff]  }
 0x1a8   : > { %4818 = vmatpush3.bf16.msra.mxu0 %v5218_v33  ;;  %v2812_v33 = vshrl.u32 %v2711_v41, 16 }
 0x1a9   : > { %4870 = vmatpush3.bf16.msra.mxu1 %v5219_v22  ;;  %4819 = vmatprep.subr.bf16.mxu0 %v5220_v7  ;;  %v2815_v22 = vshll.u32 %v2711_v41, 16  ;;  %v2777_v25 = vrot.slane %v2776_v5, 4  ;;  %v5275_v41 = vld [vmem:[%s5340_s7 + $0xf8] ss:$8 sps:$4 sm:$0xff]  }
 0x1aa   : > { %4879 = vmatprep.subr.bf16.mxu1 %v5222_v21  ;;  %v2814_v14 = vrot.slane %v2812_v33, 4  ;;  %v3006_v33 = vsel %vm5745_vm12, %v4379_v6, %v3005_v40  ;;  %v2981_v5 = vld [vmem:[#allocation2 + $0x18] sm:$0xe]  ;;  %v6070_v6 = vld [vmem:[#allocation2 + $0x14] sm:$0x1] }
 0x1ab   : > { %v2817_v17 = vrot.slane %v2815_v22, 5 }
 0x1ac   : > { %4820 = vmatpush3.bf16.msra.mxu0 %v5220_v7  ;;  %4872 = vmatmul.mubr.bf16.vlgmr.msra.gmra.mrb[0].mxu1 %v5221_v2  ;;  %v5961_v7 = vld [vmem:[#allocation2 + $0x2c] sm:$0x1]  ;;  %v2751_v2 = vshll.u32 %v5958_v47, 16 }
 0x1ad   : > { %4875 = vmatprep.mubr.bf16.mxu1 %v5223_v54  ;;  %4880 = vmatpush3.bf16.msra.mxu1 %v5222_v21  ;;  %v2798_v21 = vshrl.u32 %v2709_v48, 16  ;;  %v2779_v54 = vshll.u32 %v5961_v7, 16 }
 0x1ae   : > { %4821 = vmatprep.subr.bf16.mxu0 %v5224_v9  ;;  %4881 = vmatprep.subr.bf16.mxu1 %v5225_v12 }
 0x1af   : > { %v2800_v43 = vrot.slane %v2798_v21, 4  ;;  %v2982_v21 = vld [vmem:[#allocation2 + $0x20] sm:$0xe] }
 0x1b0   : > { %4822 = vmatpush3.bf16.msra.mxu0 %v5224_v9  ;;  %v2793_v9 = vshll.u32 %v5956_v63, 16 }
 0x1b1   : > { %4882 = vmatpush3.bf16.msra.mxu1 %v5225_v12  ;;  %4999 = vmatprep.subr.bf16.mxu0 %v5269_v49  ;;  %v2763_v12 = vrot.slane %v2762_v53, 4  ;;  %v2804_v51 = vor.u32 %v2803_v19, %v2800_v43  ;;  %v3021_v43 = vrot.slane %v5961_v7, 5  ;;  %v5245_v7 = vld [vmem:[%s6203_s3 + $0x188] sm:$0xff]  }
 0x1b2   : > { %4883 = vmatprep.subr.bf16.mxu1 %v5229_v4 }
 0x1b3   : > { %4824 = vmatmul.mubr.bf16.vlgmr.msra.gmra.mrb[8].mxu0 %v4276_v11  ;;  %v2795_v11 = vrot.slane %v2793_v9, 5  ;;  %v2805_v55 = vrot.slane %v2804_v51, 4  ;;  %v4382_v9 = vrot.slane %v2982_v21, 9 }
 0x1b4   : > { %4827 = vmatprep.mubr.bf16.mxu0 %v4277_v26  ;;  %4876 = vmatmul.mubr.bf16.gmra.mrb[4].mxu1 %v5228_v13  ;;  %v5972_v26 = vld [vmem:[#allocation2 + $0x44] sm:$0x1]  ;;  %v2753_v13 = vrot.slane %v2751_v2, 5  ;;  %v3017_v2 = vrot.slane %v5954_v61, 5 }
 0x1b5   : > { %4884 = vmatpush3.bf16.msra.mxu1 %v5229_v4  ;;  %4895 = vmatprep.mubr.bf16.mxu1 %v4367_v57  ;;  %v2767_v4 = vrot.slane %v2765_v60, 5  ;;  %v2781_v57 = vrot.slane %v2779_v54, 5  ;;  %v2796_v24 = vsel %vm5371_vm3, %v2791_v18, %v2795_v11  ;;  %v2821_v28 = vshll.u32 %v5972_v26, 16  ;;  %v5242_v60 = vld [vmem:[%s6203_s3 + $0x170] sm:$0xff]   ;;  %v2985_v11 = vld [vmem:[#allocation2 + $0x38] sm:$0xe] }
 0x1b6   : > { %4885 = vmatprep.subr.bf16.mxu1 %v5230_v20  ;;  %5000 = vmatpush3.bf16.msra.mxu0 %v5269_v49  ;;  %v2754_v15 = vsel %vm5371_vm3, %v2749_v46, %v2753_v13  ;;  %v4381_v54 = vrot.slane %v2981_v5, 9  ;;  %v3013_v18 = vrot.slane %v5958_v47, 5  ;;  %v5244_v46 = vld [vmem:[%s6203_s3 + $0x180] sm:$0xff]   ;;  %v3018_v19 = vsel %vm5745_vm12, %v4382_v9, %v3017_v2  ;;  %v5259_v5 = vld [vmem:[%s6203_s3 + $0x1d8] sm:$0xff]   ;;  %v3366_v2 = vld [vmem:[#allocation2 + $0x28] sm:$0xf] }
 0x1b7   : > { %v2768_v10 = vsel %vm5371_vm3, %v2763_v12, %v2767_v4  ;;  %v2823_v35 = vrot.slane %v2821_v28, 5  ;;  %v2983_v12 = vld [vmem:[#allocation2 + $0x28] sm:$0xe] }
 0x1b8   : > { %v4368_v29 = vcombine.low %v2754_v15, %v2768_v10  ;;  %v4383_v4 = vrot.slane %v2983_v12, 9  ;;  %v3368_v12 = vld [vmem:[#allocation2 + $0x30] sm:$0xf] }
 0x1b9   : > { %4886 = vmatpush3.bf16.msra.mxu1 %v5230_v20  ;;  %v2818_v20 = vor.u32 %v2817_v17, %v2814_v14  ;;  %v4384_v14 = vrot.slane %v2984_v36, 9  ;;  %v3025_v17 = vrot.slane %v5956_v63, 5  ;;  %v3014_v63 = vsel %vm5745_vm12, %v4381_v54, %v3013_v18  ;;  %v5257_v36 = vld [vmem:[#allocation2 + $0x40] ss:$8 sps:$4 sm:$0xff]  }
 0x1ba   : > { %4887 = vmatprep.subr.bf16.mxu1 %v5232_v45  ;;  %v4404_v47 = vcombine.low %v3014_v63, %v3018_v19  ;;  %v3419_v54 = vshrl.u32 %v3366_v2, 16  ;;  %v3422_v18 = vshll.u32 %v3366_v2, 16 }
 0x1bb   : > { %4828 = vmatmul.mubr.bf16.gmra.mrb[12].mxu0 %v4278_v30  ;;  %v2782_v30 = vsel %vm5371_vm3, %v2777_v25, %v2781_v57  ;;  %v2819_v50 = vrot.slane %v2818_v20, 4  ;;  %v3026_v61 = vsel %vm5745_vm12, %v4384_v14, %v3025_v17  ;;  %v3022_v25 = vsel %vm5745_vm12, %v4383_v4, %v3021_v43  ;;  %v5260_v14 = vld [vmem:[%s6203_s3 + $0x1e0] sm:$0xff]  }
 0x1bc   : > { %v4369_v32 = vcombine.low %v2782_v30, %v2796_v24  ;;  %5001 = vmatprep.mubr.msk.bf16.mxu0 %vm307_vm0, %v5273_v34  ;;  %v4405_v13 = vcombine.low %v3022_v25, %v3026_v61  ;;  %v3033_v20 = vrot.slane %v5972_v26, 5  ;;  %v4385_v57 = vrot.slane %v2985_v11, 9  ;;  %v5248_v26 = vld [vmem:[%s6203_s3 + $0x198] sm:$0xff]   ;;  %v5251_v30 = vld [vmem:[%s6203_s3 + $0x1b0] sm:$0xff]   ;;  %v3364_v17 = vld [vmem:[#allocation2 + $0x20] sm:$0xf] }
 0x1bd   : > { %4888 = vmatpush3.bf16.msra.mxu1 %v5232_v45  ;;  %v2980_v45 = vld [vmem:[#allocation2 + $0x10] sm:$0xe]  ;;  %v2824_v62 = vsel %vm5371_vm3, %v2819_v50, %v2823_v35  ;;  %v3029_v24 = vrot.slane %v5978_v42, 5  ;;  %v5252_v50 = vld [vmem:[%s6203_s3 + $0x1b8] sm:$0xff]   ;;  %v5254_v35 = vld [vmem:[%s6203_s3 + $0x1c0] sm:$0xff]   ;;  %v3433_v4 = vshrl.u32 %v3368_v12, 16 }
 0x1be   : > { %4889 = vmatprep.subr.bf16.mxu1 %v5233_v37  ;;  %v4380_v59 = vrot.slane %v2980_v45, 9  ;;  %v5246_v45 = vld [vmem:[%s6203_s3 + $0x190] sm:$0xff]   ;;  %v3436_v43 = vshll.u32 %v3368_v12, 16  ;;  %v3405_v19 = vshrl.u32 %v3364_v17, 16  ;;  %v3408_v61 = vshll.u32 %v3364_v17, 16 }
 0x1bf   : > { %v3030_v51 = vsel %vm5745_vm12, %v4385_v57, %v3029_v24  ;;  %v5247_v34 = vld [vmem:[#allocation2 + $0x10] ss:$8 sps:$4 sm:$0xff]   ;;  %v3374_v25 = vld [vmem:[#allocation2 + $0x48] sm:$0xf]  ;;  %v3424_v11 = vrot.slane %v3422_v18, 5 }
 0x1c0   : > { %v3010_v8 = vsel %vm5745_vm12, %v4380_v59, %v3009_v58  ;;  %v3407_v57 = vrot.slane %v3405_v19, 4  ;;  %v3410_v24 = vrot.slane %v3408_v61, 5 }
 0x1c1   : > { %4890 = vmatpush3.bf16.msra.mxu1 %v5233_v37  ;;  %v2807_v37 = vshll.u32 %v5978_v42, 16  ;;  %v4403_v22 = vcombine.low %v3006_v33, %v3010_v8  ;;  %v5249_v42 = vld [vmem:[%s6203_s3 + $0x1a0] sm:$0xff]   ;;  %v5256_v8 = vld [vmem:[%s6203_s3 + $0x1c8] sm:$0xff]  }
 0x1c2   : > { %4891 = vmatprep.subr.bf16.mxu1 %v5234_v16 }
 0x1c3   : > { %5002 = vmatmul.mubr.msk.bf16.vlgmr.msra.gmra.mrb[16].mxu0 %vm307_vm0, %v5274_v27  ;;  %v2809_v49 = vrot.slane %v2807_v37, 5  ;;  %v5250_v27 = vld [vmem:[%s6203_s3 + $0x1a8] sm:$0xff]  }
 0x1c4   : > { %5005 = vmatprep.mubr.msk.bf16.mxu0 %vm307_vm0, %v5275_v41 }
 0x1c5   : > { %4892 = vmatpush3.bf16.msra.mxu1 %v5234_v16  ;;  %v5238_v16 = vld [vmem:[%s6203_s3 + $0x150] sm:$0xff]   ;;  %v2810_v48 = vsel %vm5371_vm3, %v2805_v55, %v2809_v49  ;;  %v6072_v49 = vld [vmem:[#allocation2 + $0x1c] sm:$0x1] }
 0x1c6   : > { %4893 = vmatprep.subr.bf16.mxu1 %v5235_v3  ;;  %v4370_v53 = vcombine.low %v2810_v48, %v2824_v62  ;;  %v5253_v62 = vld [vmem:[#allocation2 + $0x20] ss:$8 sps:$4 sm:$0xff]  }
 0x1c9   : > { %4894 = vmatpush3.bf16.msra.mxu1 %v5235_v3  ;;  %v5243_v3 = vld [vmem:[%s6203_s3 + $0x178] sm:$0xff]  }
 0x1ca   : > { %4903 = vmatprep.subr.bf16.mxu1 %v5236_v23 }
 0x1cb   : > { %5006 = vmatmul.mubr.msk.bf16.gmra.mrb[20].mxu0 %vm307_vm0, %v5276_v1  ;;  %v3386_v1 = vshll.u32 %v6070_v6, 16 }
 0x1cc   : > { %4896 = vmatmul.mubr.bf16.vlgmr.msra.gmra.mrb[0].mxu1 %v4368_v29  ;;  %v3360_v29 = vld [vmem:[#allocation2 + $0x10] sm:$0xf] }
 0x1cd   : > { %4899 = vmatprep.mubr.bf16.mxu1 %v4369_v32  ;;  %4904 = vmatpush3.bf16.msra.mxu1 %v5236_v23  ;;  %v2986_v23 = vld [vmem:[#allocation2 + $0x40] sm:$0xe]  ;;  %v3377_v32 = vshrl.u32 %v3360_v29, 16  ;;  %v3380_v37 = vshll.u32 %v3360_v29, 16 }
 0x1ce   : > { %4905 = vmatprep.subr.bf16.mxu1 %v5237_v31  ;;  %v4386_v10 = vrot.slane %v2986_v23, 9  ;;  %v5261_v23 = vld [vmem:[%s6203_s3 + $0x1e8] sm:$0xff]  }
 0x1cf   : > { %v3379_v58 = vrot.slane %v3377_v32, 4  ;;  %v3382_v55 = vrot.slane %v3380_v37, 5  ;;  %v3411_v37 = vor.u32 %v3410_v24, %v3407_v57 }
 0x1d0   : > { %v3034_v15 = vsel %vm5745_vm12, %v4386_v10, %v3033_v20  ;;  %v3438_v10 = vrot.slane %v3436_v43, 5  ;;  %v3372_v20 = vld [vmem:[#allocation2 + $0x40] sm:$0xf] }
 0x1d1   : > { %4906 = vmatpush3.bf16.msra.mxu1 %v5237_v31  ;;  %v4406_v28 = vcombine.low %v3030_v51, %v3034_v15  ;;  %v3362_v31 = vld [vmem:[#allocation2 + $0x18] sm:$0xf]  ;;  %v3383_v40 = vor.u32 %v3382_v55, %v3379_v58  ;;  %v5262_v15 = vld [vmem:[%s6203_s3 + $0x1f0] sm:$0xff]   ;;  %v6098_v51 = vld [vmem:[#allocation2 + $0x2c] sm:$0x1]  ;;  %v3461_v29 = vshrl.u32 %v3372_v20, 16 }
 0x1d2   : > { %4907 = vmatprep.subr.bf16.mxu1 %v5238_v16  ;;  %v3391_v39 = vshrl.u32 %v3362_v31, 16  ;;  %v3394_v59 = vshll.u32 %v3362_v31, 16  ;;  %v6102_v31 = vld [vmem:[#allocation2 + $0x24] sm:$0x1] }
 0x1d3   : > { %v3384_v33 = vrot.slane %v3383_v40, 4 }
 0x1d4   : > { %4900 = vmatmul.mubr.bf16.gmra.mrb[4].mxu1 %v4370_v53  ;;  %v3393_v41 = vrot.slane %v3391_v39, 4  ;;  %v5255_v53 = vld [vmem:[#allocation2 + $0x30] ss:$8 sps:$4 sm:$0xff]   ;;  %v6105_v39 = vld [vmem:[#allocation2 + $0x3c] sm:$0x1] }
 0x1d5   : > { %4908 = vmatpush3.bf16.msra.mxu1 %v5238_v16  ;;  %4919 = vmatprep.mubr.bf16.mxu1 %v4403_v22  ;;  %v3396_v16 = vrot.slane %v3394_v59, 5  ;;  %v5258_v22 = vld [vmem:[%s6203_s3 + $0x1d0] sm:$0xff]   ;;  %v5263_v59 = vld [vmem:[%s6203_s3 + $0x1f8] sm:$0xff]  }
 0x1d6   : > { %4909 = vmatprep.subr.bf16.mxu1 %v5239_v0 }
 0x1d7   : > { %v3397_v48 = vor.u32 %v3396_v16, %v3393_v41  ;;  %v3414_v16 = vshll.u32 %v6102_v31, 16 }
 0x1d9   : > { %4910 = vmatpush3.bf16.msra.mxu1 %v5239_v0  ;;  %v3400_v0 = vshll.u32 %v6072_v49, 16 }
 0x1da   : > { %4911 = vmatprep.subr.bf16.mxu1 %v5240_v44 }
 0x1db   : > { %v3402_v21 = vrot.slane %v3400_v0, 5  ;;  %v6113_v0 = vld [vmem:[#allocation2 + $0x4c] sm:$0x1] }
 0x1dd   : > { %4912 = vmatpush3.bf16.msra.mxu1 %v5240_v44  ;;  %v3388_v44 = vrot.slane %v3386_v1, 5 }
 0x1de   : > { %4913 = vmatprep.subr.bf16.mxu1 %v5241_v56 }
 0x1e1   : > { %4914 = vmatpush3.bf16.msra.mxu1 %v5241_v56  ;;  %v3398_v56 = vrot.slane %v3397_v48, 4  ;;  %v3456_v48 = vshll.u32 %v6105_v39, 16 }
 0x1e2   : > { %4915 = vmatprep.subr.bf16.mxu1 %v5242_v60 }
 0x1e3   : > { %v3458_v12 = vrot.slane %v3456_v48, 5 }
 0x1e5   : > { %4916 = vmatpush3.bf16.msra.mxu1 %v5242_v60  ;;  %v3389_v60 = vsel %vm5371_vm3, %v3384_v33, %v3388_v44 }
 0x1e6   : > { %4917 = vmatprep.subr.bf16.mxu1 %v5243_v3 }
 0x1e9   : > { %4918 = vmatpush3.bf16.msra.mxu1 %v5243_v3  ;;  %v3403_v3 = vsel %vm5371_vm3, %v3398_v56, %v3402_v21 }
 0x1ea   : > { %4927 = vmatprep.subr.bf16.mxu1 %v5244_v46  ;;  %v4459_v9 = vcombine.low %v3389_v60, %v3403_v3  ;;  %v6118_v60 = vld [vmem:[#allocation2 + $0x44] sm:$0x1] }
 0x1eb   : > { %v3470_v17 = vshll.u32 %v6118_v60, 16 }
 0x1ec   : > { %4920 = vmatmul.mubr.bf16.vlgmr.msra.gmra.mrb[0].mxu1 %v4404_v47 }
 0x1ed   : > { %4923 = vmatprep.mubr.bf16.mxu1 %v4405_v13  ;;  %4928 = vmatpush3.bf16.msra.mxu1 %v5244_v46  ;;  %v3370_v46 = vld [vmem:[#allocation2 + $0x38] sm:$0xf]  ;;  %v3435_v13 = vrot.slane %v3433_v4, 4  ;;  %v5265_v4 = vld [vmem:[%s6203_s3 + $0x208] sm:$0xff]  }
 0x1ee   : > { %4929 = vmatprep.subr.bf16.mxu1 %v5245_v7  ;;  %v3447_v63 = vshrl.u32 %v3370_v46, 16  ;;  %v3450_v47 = vshll.u32 %v3370_v46, 16 }
 0x1ef   : > { %v3439_v32 = vor.u32 %v3438_v10, %v3435_v13  ;;  %v3672_v10 = vrot.slane %v6072_v49, 5 }
 0x1f1   : > { %4930 = vmatpush3.bf16.msra.mxu1 %v5245_v7  ;;  %v3421_v7 = vrot.slane %v3419_v54, 4  ;;  %v3440_v1 = vrot.slane %v3439_v32, 4  ;;  %v3642_v54 = vld [vmem:[#allocation2 + $0x10] sm:$0xe] }
 0x1f2   : > { %4931 = vmatprep.subr.bf16.mxu1 %v5246_v45 }
 0x1f4   : > { %4924 = vmatmul.mubr.bf16.gmra.mrb[4].mxu1 %v4406_v28  ;;  %v3449_v28 = vrot.slane %v3447_v63, 4  ;;  %v3643_v63 = vld [vmem:[#allocation2 + $0x18] sm:$0xe] }
 0x1f5   : > { %4932 = vmatpush3.bf16.msra.mxu1 %v5246_v45  ;;  %4943 = vmatprep.mubr.bf16.mxu1 %v5247_v34  ;;  %v3475_v45 = vshrl.u32 %v3374_v25, 16  ;;  %v3478_v34 = vshll.u32 %v3374_v25, 16  ;;  %v3668_v25 = vrot.slane %v6070_v6, 5  ;;  %v4472_v13 = vrot.slane %v3643_v63, 9  ;;  %v4524_v63 = vld [vmem:[%s6205_s5] ss:$0 sm:$0xff] }
 0x1f6   : > { %4933 = vmatprep.subr.bf16.mxu1 %v5248_v26 }
 0x1f7   : > { %v3480_v41 = vrot.slane %v3478_v34, 5  ;;  %v3645_v34 = vld [vmem:[#allocation2 + $0x28] sm:$0xe] }
 0x1f8   : > { %v4474_v32 = vrot.slane %v3645_v34, 9 }
 0x1f9   : > { %4934 = vmatpush3.bf16.msra.mxu1 %v5248_v26  ;;  %v3452_v26 = vrot.slane %v3450_v47, 5  ;;  %v4471_v47 = vrot.slane %v3642_v54, 9 }
 0x1fa   : > { %4935 = vmatprep.subr.bf16.mxu1 %v5249_v42 }
 0x1fb   : > { %v3453_v55 = vor.u32 %v3452_v26, %v3449_v28  ;;  %v3669_v6 = vsel %vm5745_vm12, %v4471_v47, %v3668_v25  ;;  %v5270_v28 = vld [vmem:[%s6203_s3 + $0x228] sm:$0xff]   ;;  %v5271_v26 = vld [vmem:[%s6203_s3 + $0x230] sm:$0xff]  }
 0x1fd   : > { %4936 = vmatpush3.bf16.msra.mxu1 %v5249_v42  ;;  %v3425_v42 = vor.u32 %v3424_v11, %v3421_v7  ;;  %v3454_v56 = vrot.slane %v3453_v55, 4  ;;  %v3472_v7 = vrot.slane %v3470_v17, 5  ;;  %v5266_v11 = vld [vmem:[%s6203_s3 + $0x210] sm:$0xff]  }
 0x1fe   : > { %4937 = vmatprep.subr.bf16.mxu1 %v5250_v27 }
 0x1ff   : > { %v3426_v40 = vrot.slane %v3425_v42, 4  ;;  %v3459_v46 = vsel %vm5371_vm3, %v3454_v56, %v3458_v12  ;;  %v3646_v42 = vld [vmem:[#allocation2 + $0x30] sm:$0xe] }
 0x201   : > { %4938 = vmatpush3.bf16.msra.mxu1 %v5250_v27  ;;  %v6100_v27 = vld [vmem:[#allocation2 + $0x34] sm:$0x1] }
 0x202   : > { %4939 = vmatprep.subr.bf16.mxu1 %v5251_v30  ;;  %v3442_v58 = vshll.u32 %v6100_v27, 16 }
 0x204   : > { %v3444_v44 = vrot.slane %v3442_v58, 5  ;;  %v3684_v58 = vrot.slane %v6100_v27, 5 }
 0x205   : > { %4940 = vmatpush3.bf16.msra.mxu1 %v5251_v30  ;;  %v3464_v30 = vshll.u32 %v3372_v20, 16 }
 0x206   : > { %4941 = vmatprep.subr.bf16.mxu1 %v5252_v50  ;;  %v3445_v2 = vsel %vm5371_vm3, %v3440_v1, %v3444_v44 }
 0x207   : > { %v4461_v43 = vcombine.low %v3445_v2, %v3459_v46 }
 0x209   : > { %4942 = vmatpush3.bf16.msra.mxu1 %v5252_v50  ;;  %v3428_v50 = vshll.u32 %v6098_v51, 16 }
 0x20a   : > { %4951 = vmatprep.subr.bf16.mxu1 %v5254_v35 }
 0x20b   : > { %v3430_v33 = vrot.slane %v3428_v50, 5  ;;  %v3647_v50 = vld [vmem:[#allocation2 + $0x38] sm:$0xe] }
 0x20c   : > { %4944 = vmatmul.mubr.bf16.vlgmr.msra.gmra.mrb[0].mxu1 %v5253_v62  ;;  %v3463_v62 = vrot.slane %v3461_v29, 4  ;;  %v5272_v29 = vld [vmem:[%s6203_s3 + $0x238] sm:$0xff]  }
 0x20d   : > { %4947 = vmatprep.mubr.bf16.mxu1 %v5255_v53  ;;  %4952 = vmatpush3.bf16.msra.mxu1 %v5254_v35  ;;  %v3477_v35 = vrot.slane %v3475_v45, 4  ;;  %v3412_v53 = vrot.slane %v3411_v37, 4  ;;  %v3431_v3 = vsel %vm5371_vm3, %v3426_v40, %v3430_v33  ;;  %v3673_v45 = vsel %vm5745_vm12, %v4472_v13, %v3672_v10 }
 0x20e   : > { %4953 = vmatprep.subr.bf16.mxu1 %v5256_v8  ;;  %v4495_v49 = vcombine.low %v3669_v6, %v3673_v45  ;;  %v3680_v37 = vrot.slane %v6098_v51, 5  ;;  %v3648_v51 = vld [vmem:[#allocation2 + $0x40] sm:$0xe] }
 0x20f   : > { %v3481_v21 = vor.u32 %v3480_v41, %v3477_v35  ;;  %v3676_v35 = vrot.slane %v6102_v31, 5  ;;  %v4476_v41 = vrot.slane %v3647_v50, 9  ;;  %v4477_v33 = vrot.slane %v3648_v51, 9 }
 0x210   : > { %v3681_v40 = vsel %vm5745_vm12, %v4474_v32, %v3680_v37 }
 0x211   : > { %4954 = vmatpush3.bf16.msra.mxu1 %v5256_v8  ;;  %v3466_v8 = vrot.slane %v3464_v30, 5  ;;  %v3482_v61 = vrot.slane %v3481_v21, 4  ;;  %v3644_v30 = vld [vmem:[#allocation2 + $0x20] sm:$0xe] }
 0x212   : > { %4955 = vmatprep.subr.bf16.mxu1 %v5258_v22  ;;  %v4473_v55 = vrot.slane %v3644_v30, 9 }
 0x214   : > { %4948 = vmatmul.mubr.bf16.gmra.mrb[4].mxu1 %v5257_v36  ;;  %v3416_v36 = vrot.slane %v3414_v16, 5  ;;  %v3688_v16 = vrot.slane %v6105_v39, 5  ;;  %v3677_v27 = vsel %vm5745_vm12, %v4473_v55, %v3676_v35  ;;  %v3692_v39 = vrot.slane %v6118_v60, 5 }
 0x215   : > { %4956 = vmatpush3.bf16.msra.mxu1 %v5258_v22  ;;  %4967 = vmatprep.mubr.bf16.mxu1 %v4459_v9  ;;  %v5264_v22 = vld [vmem:[%s6203_s3 + $0x200] sm:$0xff]   ;;  %v3484_v9 = vshll.u32 %v6113_v0, 16  ;;  %v4496_v1 = vcombine.low %v3677_v27, %v3681_v40 }
 0x216   : > { %4957 = vmatprep.subr.bf16.mxu1 %v5259_v5  ;;  %v3689_v31 = vsel %vm5745_vm12, %v4476_v41, %v3688_v16  ;;  %v3693_v44 = vsel %vm5745_vm12, %v4477_v33, %v3692_v39 }
 0x219   : > { %4958 = vmatpush3.bf16.msra.mxu1 %v5259_v5  ;;  %v3467_v5 = vor.u32 %v3466_v8, %v3463_v62  ;;  %v3649_v62 = vld [vmem:[#allocation2 + $0x48] sm:$0xe] }
 0x21a   : > { %4959 = vmatprep.subr.bf16.mxu1 %v5260_v14  ;;  %v4478_v48 = vrot.slane %v3649_v62, 9 }
 0x21b   : > { %v3468_v19 = vrot.slane %v3467_v5, 4 }
 0x21d   : > { %4960 = vmatpush3.bf16.msra.mxu1 %v5260_v14  ;;  %v3417_v14 = vsel %vm5371_vm3, %v3412_v53, %v3416_v36  ;;  %v3473_v20 = vsel %vm5371_vm3, %v3468_v19, %v3472_v7 }
 0x21e   : > { %4961 = vmatprep.subr.bf16.mxu1 %v5261_v23  ;;  %v4460_v18 = vcombine.low %v3417_v14, %v3431_v3 }
 0x221   : > { %4962 = vmatpush3.bf16.msra.mxu1 %v5261_v23  ;;  %v3486_v23 = vrot.slane %v3484_v9, 5 }
 0x222   : > { %4963 = vmatprep.subr.bf16.mxu1 %v5262_v15 }
 0x223   : > { %v3487_v57 = vsel %vm5371_vm3, %v3482_v61, %v3486_v23 }
 0x224   : > { %v4462_v24 = vcombine.low %v3473_v20, %v3487_v57 }
 0x225   : > { %4964 = vmatpush3.bf16.msra.mxu1 %v5262_v15  ;;  %v5267_v15 = vld [vmem:[%s6203_s3 + $0x218] sm:$0xff]  }
 0x226   : > { %4965 = vmatprep.subr.bf16.mxu1 %v5263_v59 }
 0x229   : > { %4966 = vmatpush3.bf16.msra.mxu1 %v5263_v59  ;;  %v4475_v59 = vrot.slane %v3646_v42, 9 }
 0x22a   : > { %4975 = vmatprep.subr.bf16.mxu1 %v5264_v22 }
 0x22b   : > { %v3685_v8 = vsel %vm5745_vm12, %v4475_v59, %v3684_v58 }
 0x22c   : > { %4968 = vmatmul.mubr.bf16.vlgmr.msra.gmra.mrb[0].mxu1 %v4460_v18  ;;  %v4497_v53 = vcombine.low %v3685_v8, %v3689_v31 }
 0x22d   : > { %4971 = vmatprep.mubr.bf16.mxu1 %v4461_v43  ;;  %4976 = vmatpush3.bf16.msra.mxu1 %v5264_v22  ;;  %v3696_v22 = vrot.slane %v6113_v0, 5 }
 0x22e   : > { %4977 = vmatprep.subr.bf16.mxu1 %v5265_v4 }
 0x22f   : > { %v3697_v56 = vsel %vm5745_vm12, %v4478_v48, %v3696_v22 }
 0x230   : > { %v4498_v21 = vcombine.low %v3693_v44, %v3697_v56 }
 0x231   : > { %4978 = vmatpush3.bf16.msra.mxu1 %v5265_v4 }
 0x232   : > { %4979 = vmatprep.subr.bf16.mxu1 %v5266_v11 }
 0x234   : > { %4972 = vmatmul.mubr.bf16.gmra.mrb[4].mxu1 %v4462_v24 }
 0x235   : > { %4980 = vmatpush3.bf16.msra.mxu1 %v5266_v11  ;;  %4991 = vmatprep.mubr.bf16.mxu1 %v4495_v49 }
 0x236   : > { %4981 = vmatprep.subr.bf16.mxu1 %v5267_v15 }
 0x239   : > { %4982 = vmatpush3.bf16.msra.mxu1 %v5267_v15 }
 0x23a   : > { %4983 = vmatprep.subr.bf16.mxu1 %v5268_v38 }
 0x23d   : > { %4984 = vmatpush3.bf16.msra.mxu1 %v5268_v38 }
 0x23e   : > { %4985 = vmatprep.subr.bf16.mxu1 %v5270_v28 }
 0x241   : > { %4986 = vmatpush3.bf16.msra.mxu1 %v5270_v28 }
 0x242   : > { %4987 = vmatprep.subr.bf16.mxu1 %v5271_v26 }
 0x245   : > { %4988 = vmatpush3.bf16.msra.mxu1 %v5271_v26 }
 0x246   : > { %4989 = vmatprep.subr.bf16.mxu1 %v5272_v29 }
 0x249   : > { %4990 = vmatpush3.bf16.msra.mxu1 %v5272_v29 }
 0x24c   : > { %4992 = vmatmul.mubr.bf16.vlgmr.msra.gmra.mrb[0].mxu1 %v4496_v1 }
 0x24d   : > { %4995 = vmatprep.mubr.bf16.mxu1 %v4497_v53 }
 0x254   : > { %4996 = vmatmul.mubr.bf16.gmra.mrb[4].mxu1 %v4498_v21 }
 0x286   : > { %v4825_v36 = vpop.f32.mrb[8].mxu0 }
 0x287   : > { %v2283_v3 = vpop.f32.mrb[9].mxu0 }
 0x288   : > { %v4826_v5 = vpop.f32.mrb[10].mxu0 }
 0x289   : > { %v2286_v9 = vpop.f32.mrb[11].mxu0 }
 0x28e   : > { %v4829_v2 = vpop.f32.mrb[12].mxu0 }
 0x28f   : > { %v2299_v12 = vpop.f32.mrb[13].mxu0 }
 0x290   : > { %v4830_v60 = vpop.f32.mrb[14].mxu0 }
 0x291   : > { %v2302_v14 = vpop.f32.mrb[15].mxu0 }
 0x296   : > { %v5003_v0 = vpop.f32.mrb[16].mxu0 }
 0x297   : > { %v3934_v17 = vpop.f32.mrb[17].mxu0 }
 0x298   : > { %v5004_v54 = vpop.f32.mrb[18].mxu0 }
 0x299   : > { %v3937_v18 = vpop.f32.mrb[19].mxu0 }
 0x29e   : > { %v5007_v46 = vpop.f32.mrb[20].mxu0 }
 0x29f   : > { %v3950_v4 = vpop.f32.mrb[21].mxu0 }
 0x2a0   : > { %v5008_v43 = vpop.f32.mrb[22].mxu0 }
 0x2a1   : > { %v3953_v52 = vpop.f32.mrb[23].mxu0 }
 0x31f   : > { %v4993_v19 = vpop.f32.mrb[0].mxu1 }
 0x320   : > { %v5009_v61 = vadd.f32 %v4993_v19, %v4825_v36  ;;  %v3813_v23 = vpop.f32.mrb[1].mxu1 }
 0x321   : > { %v5011_v47 = vadd.f32 %v3813_v23, %v2283_v3  ;;  %v4994_v25 = vpop.f32.mrb[2].mxu1 }
 0x322   : > { %v5010_v7 = vadd.f32 %v5009_v61, %v5003_v0  ;;  %v5013_v11 = vadd.f32 %v4994_v25, %v4826_v5  ;;  %v3816_v13 = vpop.f32.mrb[3].mxu1 }
 0x323   : > { %v5012_v10 = vadd.f32 %v5011_v47, %v3934_v17  ;;  %v5015_v20 = vadd.f32 %v3816_v13, %v2286_v9 }
 0x324   : > { %v3982_v57 = vadd.f32 %v5010_v7, %v4524_v63  ;;  %v5014_v6 = vadd.f32 %v5013_v11, %v5004_v54 }
 0x325   : > { %v3980_v24 = vadd.f32 %v5012_v10, %v4524_v63  ;;  %v5016_v45 = vadd.f32 %v5015_v20, %v3937_v18 }
 0x326   : > { %v3990_v15 = vmax.f32 %v3982_v57, 0.0  ;;  %v3983_v49 = vadd.f32 %v5014_v6, %v4524_v63 }
 0x327   : > { %v3988_v38 = vmax.f32 %v3980_v24, 0.0  ;;  %v3981_v28 = vadd.f32 %v5016_v45, %v4524_v63  ;;  %v4997_v26 = vpop.f32.mrb[4].mxu1 }
 0x328   : > { %3998 = vst [vmem:[%s6187_s27 + $0x10] sm:$0xff] %v3990_v15  ;;  %v3991_v34 = vmax.f32 %v3983_v49, 0.0  ;;  %v5017_v42 = vadd.f32 %v4997_v26, %v4829_v2  ;;  %v3829_v29 = vpop.f32.mrb[5].mxu1 }
 0x329   : > { %3996 = vst [vmem:[%s6187_s27] sm:$0xff] %v3988_v38  ;;  %v3989_v30 = vmax.f32 %v3981_v28, 0.0  ;;  %v5019_v32 = vadd.f32 %v3829_v29, %v2299_v12  ;;  %v4998_v37 = vpop.f32.mrb[6].mxu1 }
 0x32a   : > { %3999 = vst [vmem:[%s6187_s27 + $0x18] sm:$0xff] %v3991_v34  ;;  %v5018_v50 = vadd.f32 %v5017_v42, %v5007_v46  ;;  %v5021_v59 = vadd.f32 %v4998_v37, %v4830_v60  ;;  %v3832_v58 = vpop.f32.mrb[7].mxu1 }
 0x32b   : > { %3997 = vst [vmem:[%s6187_s27 + $0x8] sm:$0xff] %v3989_v30  ;;  %v5020_v55 = vadd.f32 %v5019_v32, %v3950_v4  ;;  %v5023_v35 = vadd.f32 %v3832_v58, %v2302_v14 }
 0x32c   : > { %v3986_v41 = vadd.f32 %v5018_v50, %v4524_v63  ;;  %v5022_v16 = vadd.f32 %v5021_v59, %v5008_v43 }
 0x32d   : > { %v3984_v40 = vadd.f32 %v5020_v55, %v4524_v63  ;;  %v5024_v62 = vadd.f32 %v5023_v35, %v3953_v52 }
 0x32e   : > { %v3994_v8 = vmax.f32 %v3986_v41, 0.0  ;;  %v3987_v51 = vadd.f32 %v5022_v16, %v4524_v63 }
 0x32f   : > { %v3992_v27 = vmax.f32 %v3984_v40, 0.0  ;;  %v3985_v1 = vadd.f32 %v5024_v62, %v4524_v63 }
 0x330   : > { %4002 = vst [vmem:[%s6187_s27 + $0x30] sm:$0xff] %v3994_v8  ;;  %v3995_v31 = vmax.f32 %v3987_v51, 0.0 }
 0x331   : > { %4000 = vst [vmem:[%s6187_s27 + $0x20] sm:$0xff] %v3992_v27  ;;  %v3993_v48 = vmax.f32 %v3985_v1, 0.0 }
 0x332   : > { %4003 = vst [vmem:[%s6187_s27 + $0x38] sm:$0xff] %v3995_v31 }
 0x333   : > { %4001 = vst [vmem:[%s6187_s27 + $0x28] sm:$0xff] %v3993_v48 }
 0x334 PF: > { %s16_s21 = sadd.s32 1, %s5283_s21  }
 0x335   : > { %p13_p5 = scmp.ge.s32.totalorder %s16_s21, 4  }
 0x337   :  { %15 = sbr.rel (!%p13_p5) target bundleno = 1 (0x1), region = 97 }

</bundles_post_ra>
